<compile_context>
chip_gen: v7x
topology: tpu7x:2x2x1
jax: 0.10.0
libtpu: 0.0.40
codegen_flags: <defaults>
</compile_context>

<pallas_src>
import jax
import jax.numpy as jnp
from jax.experimental import pallas as pl
from jax.experimental.pallas import tpu as pltpu

_EPS = 1e-12


def _round_up(x, m):
    return ((x + m - 1) // m) * m


# ---------------------------------------------------------------------------
# Prologue: one power iteration  ->  (u_new, 1 / sigma)
# ---------------------------------------------------------------------------
def _power_iter_kernel(w_ref, u_ref, u_new_ref, inv_sigma_ref):
    w = w_ref[...]                                    # (Dout, Din), native dtype
    u = u_ref[...]                                    # (1, Dout)

    # v = normalize(W^T u)
    wtu = jnp.dot(u, w, preferred_element_type=jnp.float32)            # (1, Din)
    v_nrm = jnp.sqrt(jnp.sum(wtu * wtu, axis=1, keepdims=True))        # (1, 1)
    v = wtu / jnp.maximum(v_nrm, _EPS)

    # W v : contract over Din (last dim of both) -> no transpose of W.
    wv = jax.lax.dot_general(v, w, (((1,), (1,)), ((), ())),
                             preferred_element_type=jnp.float32)       # (1, Dout)
    wv_sq = jnp.sum(wv * wv, axis=1, keepdims=True)                    # (1, 1)
    wv_nrm = jnp.maximum(jnp.sqrt(wv_sq), _EPS)

    u_new_ref[...] = (wv / wv_nrm).astype(u_new_ref.dtype)             # normalize(W v)
    sigma = wv_sq / wv_nrm                                             # == u_new . (W v)
    inv_sigma_ref[...] = 1.0 / sigma


# ---------------------------------------------------------------------------
# Main kernel: tiled  out = (x @ W^T) * inv_sigma + b
# ---------------------------------------------------------------------------
def _matmul_scale_bias_kernel(inv_sigma_ref, x_ref, w_ref, b_ref, o_ref, acc_ref):
    k = pl.program_id(2)

    @pl.when(k == 0)
    def _():
        acc_ref[...] = jnp.zeros_like(acc_ref)

    # x tile (tm, tk)  x  W tile (tn, tk), contracting the shared K (last) dims.
    acc_ref[...] += jax.lax.dot_general(
        x_ref[...], w_ref[...],
        dimension_numbers=(((1,), (1,)), ((), ())),
        preferred_element_type=jnp.float32)

    @pl.when(k == pl.num_programs(2) - 1)
    def _():
        inv_sigma = inv_sigma_ref[0]                  # f32 scalar from SMEM
        o_ref[...] = (acc_ref[...] * inv_sigma
                      + b_ref[...].astype(jnp.float32)).astype(o_ref.dtype)


# ---------------------------------------------------------------------------
# Wrapper
# ---------------------------------------------------------------------------
def spectral_linear(x, w, b, u, *, tm=None, tn=None, tk=None):
    """Forward of spectral_norm(nn.Linear).  Returns (out, u_new)."""
    B, Din = x.shape
    Dout, Din_w = w.shape
    assert Din == Din_w and b.shape == (1, Dout) and u.shape == (1, Dout)

    # ---- prologue: power iteration on the full (un-padded) W ----
    u_new, inv_sigma = pl.pallas_call(
        _power_iter_kernel,
        out_shape=(jax.ShapeDtypeStruct((1, Dout), jnp.float32),
                   jax.ShapeDtypeStruct((1, 1), jnp.float32)),
        grid=(1,),
        in_specs=[pl.BlockSpec((Dout, Din), lambda i: (0, 0)),
                  pl.BlockSpec((1, Dout), lambda i: (0, 0))],
        out_specs=[pl.BlockSpec((1, Dout), lambda i: (0, 0)),
                   pl.BlockSpec((1, 1), lambda i: (0, 0))],
        compiler_params=pltpu.CompilerParams(
            dimension_semantics=("arbitrary",)),
    )(w, u)
    inv_sigma = inv_sigma.reshape((1,))               # scalar-prefetch operand

    # ---- tile sizes: MXU-aligned, modest VMEM footprint on v5e/v6e/v7x ----
    tm = tm or min(256, _round_up(B, 8))
    tn = tn or min(256, _round_up(Dout, 128))
    tk = tk or min(512, _round_up(Din, 128))

    Mp, Np, Kp = _round_up(B, tm), _round_up(Dout, tn), _round_up(Din, tk)
    xp = x if (Mp, Kp) == (B, Din) else jnp.pad(x, ((0, Mp - B), (0, Kp - Din)))
    wp = w if (Np, Kp) == (Dout, Din) else jnp.pad(w, ((0, Np - Dout), (0, Kp - Din)))
    bp = b if Np == Dout else jnp.pad(b, ((0, 0), (0, Np - Dout)))

    grid = (Mp // tm, Np // tn, Kp // tk)

    out = pl.pallas_call(
        _matmul_scale_bias_kernel,
        out_shape=jax.ShapeDtypeStruct((Mp, Np), x.dtype),
        grid_spec=pltpu.PrefetchScalarGridSpec(
            num_scalar_prefetch=1,
            grid=grid,
            in_specs=[
                pl.BlockSpec((tm, tk), lambda i, j, k, inv_s: (i, k)),
                pl.BlockSpec((tn, tk), lambda i, j, k, inv_s: (j, k)),
                pl.BlockSpec((1, tn), lambda i, j, k, inv_s: (0, j)),
            ],
            out_specs=pl.BlockSpec((tm, tn), lambda i, j, k, inv_s: (i, j)),
            scratch_shapes=[pltpu.VMEM((tm, tn), jnp.float32)],
        ),
        compiler_params=pltpu.CompilerParams(
            dimension_semantics=("parallel", "parallel", "arbitrary"),
            vmem_limit_bytes=32 * 1024 * 1024),
    )(inv_sigma, xp, wp, bp)

    if (Mp, Np) != (B, Dout):
        out = out[:B, :Dout]
    return out, u_new


# ---------------------------------------------------------------------------
# Pure-JAX reference (matches torch spectral_norm training-mode forward)
# ---------------------------------------------------------------------------
def reference(x, w, b, u):
    wtu = u @ w
    v = wtu / jnp.maximum(jnp.linalg.norm(wtu), _EPS)
    wv = v @ w.T
    u_new = wv / jnp.maximum(jnp.linalg.norm(wv), _EPS)
    sigma = jnp.sum(u_new * wv)
    return x @ (w / sigma).T + b, u_new


if __name__ == "__main__":
    # Lane-dense, (8,128)-friendly shapes; grid = (1, 2, 2) exercises the
    # K-accumulator path, N tiling and zero-padding of Dout (384 -> 512).
    batch, dim_in, dim_out = 48, 1024, 384

    key = jax.random.PRNGKey(0)
    k_x, k_w, k_b, k_u = jax.random.split(key, 4)

    x = jax.random.normal(k_x, (batch, dim_in), dtype=jnp.float32)

    # Deterministic parameter init (nn.Linear-style uniform bounds).
    bound = float(dim_in) ** -0.5
    w = jax.random.uniform(k_w, (dim_out, dim_in), minval=-bound, maxval=bound,
                           dtype=jnp.float32)
    b = jax.random.uniform(k_b, (1, dim_out), minval=-bound, maxval=bound,
                           dtype=jnp.float32)
    # spectral_norm's persistent power-iteration vector u: random normal, normalized.
    u0 = jax.random.normal(k_u, (1, dim_out), dtype=jnp.float32)
    u = u0 / jnp.maximum(jnp.linalg.norm(u0), _EPS)

    out, u_new = spectral_linear(x, w, b, u)
    out = jax.block_until_ready(out)
    u_new = jax.block_until_ready(u_new)

    ref_out, ref_u = reference(x, w, b, u)
    assert out.shape == (batch, dim_out)
    assert jnp.allclose(out, ref_out, atol=1e-3, rtol=1e-3), "output mismatch vs reference"
    assert jnp.allclose(u_new, ref_u, atol=1e-3, rtol=1e-3), "u_new mismatch vs reference"

    print("KERNEL_OK")
</pallas_src>

<mosaic_0001>
module attributes {stable_mosaic.version = 11 : i64} {
  func.func @_power_iter_kernel(%arg0: i32, %arg1: memref<384x1024xf32, #tpu.memory_space<vmem>>, %arg2: memref<1x384xf32, #tpu.memory_space<vmem>>, %arg3: memref<1x384xf32, #tpu.memory_space<vmem>>, %arg4: memref<1x1xf32, #tpu.memory_space<vmem>>) attributes {dimension_semantics = [#tpu.dimension_semantics<arbitrary>], iteration_bounds = array<i64: 1>, scalar_prefetch = 0 : i64, scratch_operands = 0 : i64, tpu.core_type = #tpu.core_type<tc>, window_params = [{pipeline_mode = #tpu.pipeline_mode<synchronous>, transform_indices = @transform_0, window_bounds = array<i64: 384, 1024>}, {pipeline_mode = #tpu.pipeline_mode<synchronous>, transform_indices = @transform_1, window_bounds = array<i64: 1, 384>}, {pipeline_mode = #tpu.pipeline_mode<synchronous>, transform_indices = @transform_2, window_bounds = array<i64: 1, 384>}, {pipeline_mode = #tpu.pipeline_mode<synchronous>, transform_indices = @transform_3, window_bounds = array<i64: 1, 1>}]} {
    %c0 = arith.constant 0 : index
    %c0_0 = arith.constant 0 : index
    %0 = vector.load %arg1[%c0, %c0_0] : memref<384x1024xf32, #tpu.memory_space<vmem>>, vector<384x1024xf32>
    %c0_1 = arith.constant 0 : index
    %c0_2 = arith.constant 0 : index
    %1 = vector.load %arg2[%c0_1, %c0_2] : memref<1x384xf32, #tpu.memory_space<vmem>>, vector<1x384xf32>
    %cst = arith.constant dense<0.000000e+00> : vector<1x1024xf32>
    %2 = tpu.matmul %1, %0, %cst {dimension_numbers = #tpu.dot_dimension_numbers<[1], [0], [0], [1], [0, 0, 1, 1], [], []>} : vector<1x384xf32>, vector<384x1024xf32>, vector<1x1024xf32> -> vector<1x1024xf32>
    %3 = arith.mulf %2, %2 : vector<1x1024xf32>
    %cst_3 = arith.constant dense<0.000000e+00> : vector<1xf32>
    %4 = vector.multi_reduction <add>, %3, %cst_3 [1] : vector<1x1024xf32> to vector<1xf32>
    %5 = vector.shape_cast %4 : vector<1xf32> to vector<1x1xf32>
    %6 = math.sqrt %5 : vector<1x1xf32>
    %cst_4 = arith.constant 9.99999996E-13 : f32
    %7 = vector.broadcast %cst_4 : f32 to vector<1x1xf32>
    %8 = arith.maximumf %6, %7 : vector<1x1xf32>
    %9 = vector.broadcast %8 : vector<1x1xf32> to vector<1x1024xf32>
    %10 = arith.divf %2, %9 : vector<1x1024xf32>
    %cst_5 = arith.constant dense<0.000000e+00> : vector<1x384xf32>
    %11 = tpu.matmul %10, %0, %cst_5 {dimension_numbers = #tpu.dot_dimension_numbers<[1], [1], [0], [0], [0, 0, 1, 0], [], []>} : vector<1x1024xf32>, vector<384x1024xf32>, vector<1x384xf32> -> vector<1x384xf32>
    %12 = arith.mulf %11, %11 : vector<1x384xf32>
    %cst_6 = arith.constant dense<0.000000e+00> : vector<1xf32>
    %13 = vector.multi_reduction <add>, %12, %cst_6 [1] : vector<1x384xf32> to vector<1xf32>
    %14 = vector.shape_cast %13 : vector<1xf32> to vector<1x1xf32>
    %15 = math.sqrt %14 : vector<1x1xf32>
    %cst_7 = arith.constant 9.99999996E-13 : f32
    %16 = vector.broadcast %cst_7 : f32 to vector<1x1xf32>
    %17 = arith.maximumf %15, %16 : vector<1x1xf32>
    %18 = vector.broadcast %17 : vector<1x1xf32> to vector<1x384xf32>
    %19 = arith.divf %11, %18 : vector<1x384xf32>
    %c0_8 = arith.constant 0 : index
    %c0_9 = arith.constant 0 : index
    %20 = vector.load %arg3[%c0_8, %c0_9] : memref<1x384xf32, #tpu.memory_space<vmem>>, vector<1x384xf32>
    tpu.vector_store %arg3[%c0_8, %c0_9], %19 {strides = array<i32>} : memref<1x384xf32, #tpu.memory_space<vmem>>, vector<1x384xf32>,
    %21 = arith.divf %14, %17 : vector<1x1xf32>
    %cst_10 = arith.constant 1.000000e+00 : f32
    %22 = vector.broadcast %cst_10 : f32 to vector<1x1xf32>
    %23 = arith.divf %22, %21 : vector<1x1xf32>
    %c0_11 = arith.constant 0 : index
    %c0_12 = arith.constant 0 : index
    %24 = vector.load %arg4[%c0_11, %c0_12] : memref<1x1xf32, #tpu.memory_space<vmem>>, vector<1x1xf32>
    tpu.vector_store %arg4[%c0_11, %c0_12], %23 {strides = array<i32>} : memref<1x1xf32, #tpu.memory_space<vmem>>, vector<1x1xf32>,
    return
  }
  func.func @transform_0(%arg0: i32) -> (i32, i32) {
    %c0_i32 = arith.constant 0 : i32
    %c0_i32_0 = arith.constant 0 : i32
    %c0_i32_1 = arith.constant 0 : i32
    return %c0_i32, %c0_i32_0 : i32, i32
  }
  func.func @transform_1(%arg0: i32) -> (i32, i32) {
    %c0_i32 = arith.constant 0 : i32
    %c0_i32_0 = arith.constant 0 : i32
    %c0_i32_1 = arith.constant 0 : i32
    return %c0_i32, %c0_i32_0 : i32, i32
  }
  func.func @transform_2(%arg0: i32) -> (i32, i32) {
    %c0_i32 = arith.constant 0 : i32
    %c0_i32_0 = arith.constant 0 : i32
    %c0_i32_1 = arith.constant 0 : i32
    return %c0_i32, %c0_i32_0 : i32, i32
  }
  func.func @transform_3(%arg0: i32) -> (i32, i32) {
    %c0_i32 = arith.constant 0 : i32
    %c0_i32_0 = arith.constant 0 : i32
    %c0_i32_1 = arith.constant 0 : i32
    return %c0_i32, %c0_i32_0 : i32, i32
  }
}

</mosaic_0001>

<bundles_post_ra>
// kernel: tpu_custom_call.1
= control target key start
LH: loop header
LB: loop body
LE: loop exit
PB: predicated region body
PF: predicated region fallthrough
CT: control target
= control target key end

     0   :  { %9 = vsyncpa [#allocation3], 0  ;;  %s3527_s0 = inlined_call_operand.hbm [shape: f32[384,1024], index: 0, kind: input, shape index: {}]   ;;  %s3528_s1 = inlined_call_operand.hbm [shape: f32[1,384], index: 1, kind: input, shape index: {}]   ;;  %s3529_s2 = inlined_call_operand.hbm [shape: f32[1,384], index: 2, kind: output, shape index: {0}]   ;;  %s3530_s3 = inlined_call_operand.hbm [shape: f32[1,1], index: 3, kind: output, shape index: {1}]  }
   0x1   :  { %10 = vsyncpa [#allocation6], 0 }
   0x2   :  { %11 = vsyncpa [#allocation4], 0 }
   0x3   :  { %12 = vsyncpa [#allocation9], 0  ;;  %s2608_s12 = smov [#allocation2]   ;;  %s2512_s16 = scalar_lea.hbm %s3527_s0, 49152 }
   0x4   :  { %s18_s13 = sshll.u32 %s2608_s12, 4  ;;  %p2513_p0 = scmp.ne.s32.totalorder %s3527_s0, %s2512_s16  ;;  %s19_s13 = int_to_ptr.vmem [resolvable:$true] %s18_s13 }
   0x5   :  { %p2516_p1 = scmp.lt.u32.totalorder %s2512_s16, %s3527_s0 }
   0x7   :  { %p2518_p2 = pnand %p2516_p1, %p2513_p0 }
   0x9   :  { %2521 = shalt.err (!%p2518_p2)
}
   0xa   :  { %s2522_s21 = scalar_lea.vmem %s19_s13, 49152  ;;  %p2527_p4 = scmp.lt.s32.totalorder %s19_s13, %s19_s13 }
   0xb   :  { %p2523_p3 = scmp.ne.s32.totalorder %s19_s13, %s2522_s21  ;;  %p2528_p5 = scmp.lt.s32.totalorder %s2522_s21, %s2522_s21 }
   0xd   :  { %p2529_p6 = por %p2528_p5, %p2527_p4 }
   0xf   :  { %p2530_p7 = pnand %p2529_p6, %p2523_p3 }
  0x11   :  { %2533 = shalt.err (!%p2530_p7)
}
  0x12   :  { %s2609_s22 = smov 1024   ;;  %s2610_s23 = smov 64  }
  0x13   :  { %24 = dma.hbm_to_vmem [thread:$0]  %s3527_s0, 49152, %s19_s13, [#allocation3], %s2609_s22, %s2609_s22, %s2610_s23  }
  0x14   :  { %s2611_s26 = smov [#allocation5]   ;;  %s2534_s30 = scalar_lea.hbm %s3528_s1, 48 }
  0x15   :  { %s31_s27 = sshll.u32 %s2611_s26, 4  ;;  %p2535_p8 = scmp.ne.s32.totalorder %s3528_s1, %s2534_s30  ;;  %s32_s27 = int_to_ptr.vmem [resolvable:$true] %s31_s27 }
  0x16   :  { %p2538_p9 = scmp.lt.u32.totalorder %s2534_s30, %s3528_s1 }
  0x18   :  { %p2540_p10 = pnand %p2538_p9, %p2535_p8 }
  0x1a   :  { %2543 = shalt.err (!%p2540_p10)
}
  0x1b   :  { %s2544_s8 = scalar_lea.vmem %s32_s27, 48  ;;  %s2548_s0 = scalar_lea.vmem %s32_s27, 64 }
  0x1c   :  { %p2545_p11 = scmp.ne.s32.totalorder %s32_s27, %s2544_s8  ;;  %p2549_p12 = scmp.lt.s32.totalorder %s32_s27, %s32_s27 }
  0x1d   :  { %p2550_p13 = scmp.lt.s32.totalorder %s2548_s0, %s2544_s8 }
  0x1f   :  { %p2551_p0 = por %p2550_p13, %p2549_p12 }
  0x21   :  { %p2552_p1 = pnand %p2551_p0, %p2545_p11 }
  0x23   :  { %2555 = shalt.err (!%p2552_p1)
}
  0x24   :  { %34 = dma.hbm_to_vmem [thread:$0]  %s3528_s1, 48, %s32_s27, [#allocation6]  }
  0x25   :  { %2600 = dma.done.wait [#allocation3], 49152  }
  0x26   :  { %2601 = vsyncadd [#allocation3], 4294918144 }
  0x27   :  { %2602 = dma.done.wait [#allocation6], 48  }
  0x28   :  { %2603 = vsyncadd [#allocation6], 4294967248  ;;  %v42_v0 = vld [vmem:[#allocation2 + $0x8] sm:$0xff]  ;;  %v44_v2 = vld [vmem:[#allocation2 + $0x18] sm:$0xff]  ;;  %vm1018_vm0 = vcmask 1040384   ;;  %s2614_s1 = smov [#allocation7]  }
  0x29   :  { %v50_v1 = vld [vmem:[#allocation2 + $0x48] sm:$0xff]  ;;  %v52_v4 = vld [vmem:[#allocation2 + $0x58] sm:$0xff]  ;;  %v41_v5 = vld [vmem:[#allocation2] sm:$0xff]  ;;  %s1682_s11 = sshll.u32 %s2614_s1, 4  ;;  %s2615_s12 = smov [#allocation8]   ;;  %vm1674_vm6 = vcmask 0   ;;  %s1683_s11 = int_to_ptr.vmem [resolvable:$true] %s1682_s11 }
  0x2a   :  { %v2660_v3 = vpack.c.bf16 %v50_v1, %v42_v0  ;;  %v49_v6 = vld [vmem:[#allocation2 + $0x40] sm:$0xff]  ;;  %v2662_v7 = vpack.c.bf16 %v52_v4, %v44_v2  ;;  %v43_v9 = vld [vmem:[#allocation2 + $0x10] sm:$0xff]  ;;  %v58_v11 = vld [vmem:[#allocation2 + $0x88] sm:$0xff]  ;;  %s1692_s13 = sshll.u32 %s2615_s12, 4  ;;  %s2556_s14 = scalar_lea.vmem %s1683_s11, 48  ;;  %s3494_s13 = int_to_ptr.vmem [resolvable:$true] %s1692_s13 }
  0x2b   :  { %v2664_v8 = vpack.c.bf16 %v49_v6, %v41_v5  ;;  %v51_v10 = vld [vmem:[#allocation2 + $0x50] sm:$0xff]  ;;  %v66_v13 = vld [vmem:[#allocation2 + $0xc8] sm:$0xff]  ;;  %v60_v14 = vld [vmem:[#allocation2 + $0x98] sm:$0xff]  ;;  %p2557_p2 = scmp.ne.s32.totalorder %s1683_s11, %s2556_s14  ;;  %s2560_s15 = scalar_lea.vmem %s1683_s11, 64 }
  0x2c   :  { %1707 = vmatprep.subr.bf16.mxu0 %v2660_v3  ;;  %v2667_v12 = vpack.c.bf16 %v51_v10, %v43_v9  ;;  %v68_v15 = vld [vmem:[#allocation2 + $0xd8] sm:$0xff]  ;;  %1803 = vmatprep.subr.bf16.mxu1 %v2662_v7  ;;  %v2671_v16 = vpack.c.bf16 %v66_v13, %v58_v11  ;;  %v57_v18 = vld [vmem:[#allocation2 + $0x80] sm:$0xff]  ;;  %v59_v20 = vld [vmem:[#allocation2 + $0x90] sm:$0xff]  ;;  %p2561_p3 = scmp.lt.s32.totalorder %s1683_s11, %s1683_s11  ;;  %p2562_p4 = scmp.lt.s32.totalorder %s2560_s15, %s2556_s14 }
  0x2d   :  { %1709 = vmatpush1.bf16.msra.mxu0 %v2664_v8  ;;  %v2673_v17 = vpack.c.bf16 %v68_v15, %v60_v14  ;;  %v65_v19 = vld [vmem:[#allocation2 + $0xc0] sm:$0xff]  ;;  %v67_v22 = vld [vmem:[#allocation2 + $0xd0] sm:$0xff]  ;;  %v74_v23 = vld [vmem:[#allocation2 + $0x108] sm:$0xff] }
  0x2e   :  { %1805 = vmatpush1.bf16.msra.mxu1 %v2667_v12  ;;  %v2676_v21 = vpack.c.bf16 %v65_v19, %v57_v18  ;;  %v82_v24 = vld [vmem:[#allocation2 + $0x148] sm:$0xff]  ;;  %1711 = vmatprep.subr.bf16.mxu0 %v2671_v16  ;;  %v2680_v25 = vpack.c.bf16 %v67_v22, %v59_v20  ;;  %v76_v27 = vld [vmem:[#allocation2 + $0x118] sm:$0xff]  ;;  %v73_v29 = vld [vmem:[#allocation2 + $0x100] sm:$0xff]  ;;  %p2563_p5 = por %p2562_p4, %p2561_p3 }
  0x2f   :  { %1807 = vmatprep.subr.bf16.mxu1 %v2673_v17  ;;  %v2682_v26 = vpack.c.bf16 %v82_v24, %v74_v23  ;;  %v84_v28 = vld [vmem:[#allocation2 + $0x158] sm:$0xff]  ;;  %v81_v31 = vld [vmem:[#allocation2 + $0x140] sm:$0xff]  ;;  %v75_v32 = vld [vmem:[#allocation2 + $0x110] sm:$0xff] }
  0x30   :  { %v2684_v30 = vpack.c.bf16 %v84_v28, %v76_v27  ;;  %v83_v33 = vld [vmem:[#allocation2 + $0x150] sm:$0xff]  ;;  %v2687_v34 = vpack.c.bf16 %v81_v31, %v73_v29  ;;  %v90_v35 = vld [vmem:[#allocation2 + $0x188] sm:$0xff]  ;;  %v92_v37 = vld [vmem:[#allocation2 + $0x198] sm:$0xff]  ;;  %p2564_p6 = pnand %p2563_p5, %p2557_p2 }
  0x31   :  { %1713 = vmatpush1.bf16.msra.mxu0 %v2676_v21  ;;  %v98_v36 = vld [vmem:[#allocation2 + $0x1c8] sm:$0xff]  ;;  %v2691_v38 = vpack.c.bf16 %v83_v33, %v75_v32  ;;  %v100_v40 = vld [vmem:[#allocation2 + $0x1d8] sm:$0xff]  ;;  %v89_v41 = vld [vmem:[#allocation2 + $0x180] sm:$0xff] }
  0x32   :  { %1809 = vmatpush1.bf16.msra.mxu1 %v2680_v25  ;;  %1715 = vmatprep.subr.bf16.mxu0 %v2682_v26  ;;  %v2693_v39 = vpack.c.bf16 %v98_v36, %v90_v35  ;;  %v97_v42 = vld [vmem:[#allocation2 + $0x1c0] sm:$0xff]  ;;  %v2696_v43 = vpack.c.bf16 %v100_v40, %v92_v37  ;;  %v91_v44 = vld [vmem:[#allocation2 + $0x190] sm:$0xff]  ;;  %v106_v46 = vld [vmem:[#allocation2 + $0x208] sm:$0xff] }
  0x33   :  { %1811 = vmatprep.subr.bf16.mxu1 %v2684_v30  ;;  %v99_v45 = vld [vmem:[#allocation2 + $0x1d0] sm:$0xff]  ;;  %v114_v47 = vld [vmem:[#allocation2 + $0x248] sm:$0xff]  ;;  %v108_v48 = vld [vmem:[#allocation2 + $0x218] sm:$0xff]  ;;  %v2699_v50 = vpack.c.bf16 %v97_v42, %v89_v41 }
  0x34   :  { %v116_v49 = vld [vmem:[#allocation2 + $0x258] sm:$0xff]  ;;  %v2703_v51 = vpack.c.bf16 %v99_v45, %v91_v44  ;;  %v2705_v52 = vpack.c.bf16 %v114_v47, %v106_v46  ;;  %v105_v53 = vld [vmem:[#allocation2 + $0x200] sm:$0xff]  ;;  %v107_v55 = vld [vmem:[#allocation2 + $0x210] sm:$0xff] }
  0x35   :  { %1717 = vmatpush1.bf16.msra.mxu0 %v2687_v34  ;;  %v113_v54 = vld [vmem:[#allocation2 + $0x240] sm:$0xff]  ;;  %v2708_v56 = vpack.c.bf16 %v116_v49, %v108_v48  ;;  %v115_v57 = vld [vmem:[#allocation2 + $0x250] sm:$0xff]  ;;  %v122_v58 = vld [vmem:[#allocation2 + $0x288] sm:$0xff] }
  0x36   :  { %1813 = vmatpush1.bf16.msra.mxu1 %v2691_v38  ;;  %1719 = vmatprep.subr.bf16.mxu0 %v2693_v39  ;;  %v130_v59 = vld [vmem:[#allocation2 + $0x2c8] sm:$0xff]  ;;  %v124_v60 = vld [vmem:[#allocation2 + $0x298] sm:$0xff]  ;;  %v2711_v62 = vpack.c.bf16 %v113_v54, %v105_v53  ;;  %v2715_v63 = vpack.c.bf16 %v115_v57, %v107_v55  ;;  %v121_v1 = vld [vmem:[#allocation2 + $0x280] sm:$0xff] }
  0x37   :  { %1815 = vmatprep.subr.bf16.mxu1 %v2696_v43  ;;  %v132_v61 = vld [vmem:[#allocation2 + $0x2d8] sm:$0xff]  ;;  %v2717_v0 = vpack.c.bf16 %v130_v59, %v122_v58  ;;  %v129_v2 = vld [vmem:[#allocation2 + $0x2c0] sm:$0xff]  ;;  %v123_v4 = vld [vmem:[#allocation2 + $0x290] sm:$0xff] }
  0x38   :  { %v2720_v5 = vpack.c.bf16 %v132_v61, %v124_v60  ;;  %v131_v6 = vld [vmem:[#allocation2 + $0x2d0] sm:$0xff]  ;;  %v138_v9 = vld [vmem:[#allocation2 + $0x308] sm:$0xff]  ;;  %v140_v11 = vld [vmem:[#allocation2 + $0x318] sm:$0xff]  ;;  %v2723_v14 = vpack.c.bf16 %v129_v2, %v121_v1 }
  0x39   :  { %1721 = vmatpush1.bf16.msra.mxu0 %v2699_v50  ;;  %v146_v10 = vld [vmem:[#allocation2 + $0x348] sm:$0xff]  ;;  %v148_v13 = vld [vmem:[#allocation2 + $0x358] sm:$0xff]  ;;  %v2727_v15 = vpack.c.bf16 %v131_v6, %v123_v4  ;;  %v137_v19 = vld [vmem:[#allocation2 + $0x300] sm:$0xff]  ;;  %v3531_v4 = vlaneseq }
  0x3a   :  { %1817 = vmatpush1.bf16.msra.mxu1 %v2703_v51  ;;  %1723 = vmatprep.subr.bf16.mxu0 %v2705_v52  ;;  %v2729_v18 = vpack.c.bf16 %v146_v10, %v138_v9  ;;  %v145_v20 = vld [vmem:[#allocation2 + $0x340] sm:$0xff]  ;;  %v139_v22 = vld [vmem:[#allocation2 + $0x310] sm:$0xff]  ;;  %v2732_v23 = vpack.c.bf16 %v148_v13, %v140_v11  ;;  %v154_v27 = vld [vmem:[#allocation2 + $0x388] sm:$0xff] }
  0x3b   :  { %1819 = vmatprep.subr.bf16.mxu1 %v2708_v56  ;;  %v147_v24 = vld [vmem:[#allocation2 + $0x350] sm:$0xff]  ;;  %v162_v28 = vld [vmem:[#allocation2 + $0x3c8] sm:$0xff]  ;;  %v156_v29 = vld [vmem:[#allocation2 + $0x398] sm:$0xff]  ;;  %v2735_v32 = vpack.c.bf16 %v145_v20, %v137_v19 }
  0x3c   :  { %v164_v31 = vld [vmem:[#allocation2 + $0x3d8] sm:$0xff]  ;;  %v2739_v33 = vpack.c.bf16 %v147_v24, %v139_v22  ;;  %v2741_v35 = vpack.c.bf16 %v162_v28, %v154_v27  ;;  %v153_v36 = vld [vmem:[#allocation2 + $0x380] sm:$0xff]  ;;  %v155_v40 = vld [vmem:[#allocation2 + $0x390] sm:$0xff] }
  0x3d   :  { %1725 = vmatpush1.bf16.msra.mxu0 %v2711_v62  ;;  %v161_v37 = vld [vmem:[#allocation2 + $0x3c0] sm:$0xff]  ;;  %v2744_v41 = vpack.c.bf16 %v164_v31, %v156_v29  ;;  %v163_v42 = vld [vmem:[#allocation2 + $0x3d0] sm:$0xff]  ;;  %v170_v44 = vld [vmem:[#allocation2 + $0x408] sm:$0xff]  ;;  %v2771_v31 = vshrl.u32 %v3531_v4, 7 }
  0x3e   :  { %1821 = vmatpush1.bf16.msra.mxu1 %v2715_v63  ;;  %1727 = vmatprep.subr.bf16.mxu0 %v2717_v0  ;;  %v178_v45 = vld [vmem:[#allocation2 + $0x448] sm:$0xff]  ;;  %v172_v46 = vld [vmem:[#allocation2 + $0x418] sm:$0xff]  ;;  %v2747_v48 = vpack.c.bf16 %v161_v37, %v153_v36  ;;  %v2751_v49 = vpack.c.bf16 %v163_v42, %v155_v40  ;;  %v169_v54 = vld [vmem:[#allocation2 + $0x400] sm:$0xff] }
  0x3f   :  { %1823 = vmatprep.subr.bf16.mxu1 %v2720_v5  ;;  %v180_v47 = vld [vmem:[#allocation2 + $0x458] sm:$0xff]  ;;  %v2753_v53 = vpack.c.bf16 %v178_v45, %v170_v44  ;;  %v177_v55 = vld [vmem:[#allocation2 + $0x440] sm:$0xff]  ;;  %v171_v57 = vld [vmem:[#allocation2 + $0x410] sm:$0xff]  ;;  %3674 = vst [vmem:[#allocation14_spill] sm:$0xff] %v2771_v31 }
  0x40   :  { %v2756_v58 = vpack.c.bf16 %v180_v47, %v172_v46  ;;  %v179_v59 = vld [vmem:[#allocation2 + $0x450] sm:$0xff]  ;;  %v186_v60 = vld [vmem:[#allocation2 + $0x488] sm:$0xff]  ;;  %v188_v1 = vld [vmem:[#allocation2 + $0x498] sm:$0xff]  ;;  %v2759_v6 = vpack.c.bf16 %v177_v55, %v169_v54 }
  0x41   :  { %1729 = vmatpush1.bf16.msra.mxu0 %v2723_v14  ;;  %v194_v61 = vld [vmem:[#allocation2 + $0x4c8] sm:$0xff]  ;;  %v196_v2 = vld [vmem:[#allocation2 + $0x4d8] sm:$0xff]  ;;  %v2763_v9 = vpack.c.bf16 %v179_v59, %v171_v57  ;;  %v185_v11 = vld [vmem:[#allocation2 + $0x480] sm:$0xff] }
  0x42   :  { %1825 = vmatpush1.bf16.msra.mxu1 %v2727_v15  ;;  %1731 = vmatprep.subr.bf16.mxu0 %v2729_v18  ;;  %v2765_v10 = vpack.c.bf16 %v194_v61, %v186_v60  ;;  %v193_v13 = vld [vmem:[#allocation2 + $0x4c0] sm:$0xff]  ;;  %v187_v19 = vld [vmem:[#allocation2 + $0x490] sm:$0xff]  ;;  %v2768_v20 = vpack.c.bf16 %v196_v2, %v188_v1  ;;  %v202_v24 = vld [vmem:[#allocation2 + $0x508] sm:$0xff]  ;;  %v433_v60 = vsub.s32 1, %v2771_v31 }
  0x43   :  { %1827 = vmatprep.subr.bf16.mxu1 %v2732_v23  ;;  %v195_v22 = vld [vmem:[#allocation2 + $0x4d0] sm:$0xff]  ;;  %v210_v27 = vld [vmem:[#allocation2 + $0x548] sm:$0xff]  ;;  %v204_v28 = vld [vmem:[#allocation2 + $0x518] sm:$0xff]  ;;  %v2774_v36 = vpack.c.bf16 %v193_v13, %v185_v11 }
  0x44   :  { %v212_v29 = vld [vmem:[#allocation2 + $0x558] sm:$0xff]  ;;  %v2778_v37 = vpack.c.bf16 %v195_v22, %v187_v19  ;;  %v2780_v40 = vpack.c.bf16 %v210_v27, %v202_v24  ;;  %v201_v42 = vld [vmem:[#allocation2 + $0x500] sm:$0xff]  ;;  %v203_v45 = vld [vmem:[#allocation2 + $0x510] sm:$0xff] }
  0x45   :  { %1733 = vmatpush1.bf16.msra.mxu0 %v2735_v32  ;;  %3675 = vst [vmem:[#allocation15_spill] sm:$0xff] %v2774_v36  ;;  %v209_v44 = vld [vmem:[#allocation2 + $0x540] sm:$0xff]  ;;  %v2783_v46 = vpack.c.bf16 %v212_v29, %v204_v28  ;;  %v211_v47 = vld [vmem:[#allocation2 + $0x550] sm:$0xff]  ;;  %v218_v54 = vld [vmem:[#allocation2 + $0x588] sm:$0xff] }
  0x46   :  { %1829 = vmatpush1.bf16.msra.mxu1 %v2739_v33  ;;  %1735 = vmatprep.subr.bf16.mxu0 %v2741_v35  ;;  %3676 = vst [vmem:[#allocation16_spill] sm:$0xff] %v2780_v40  ;;  %v226_v55 = vld [vmem:[#allocation2 + $0x5c8] sm:$0xff]  ;;  %v220_v57 = vld [vmem:[#allocation2 + $0x598] sm:$0xff]  ;;  %v2787_v61 = vpack.c.bf16 %v209_v44, %v201_v42  ;;  %v217_v1 = vld [vmem:[#allocation2 + $0x580] sm:$0xff]  ;;  %v2791_v2 = vpack.c.bf16 %v211_v47, %v203_v45 }
  0x47   :  { %1831 = vmatprep.subr.bf16.mxu1 %v2744_v41  ;;  %3677 = vst [vmem:[#allocation17_spill] sm:$0xff] %v2783_v46  ;;  %v228_v59 = vld [vmem:[#allocation2 + $0x5d8] sm:$0xff]  ;;  %v2793_v11 = vpack.c.bf16 %v226_v55, %v218_v54  ;;  %v225_v13 = vld [vmem:[#allocation2 + $0x5c0] sm:$0xff]  ;;  %v219_v19 = vld [vmem:[#allocation2 + $0x590] sm:$0xff] }
  0x48   :  { %3678 = vst [vmem:[#allocation18_spill] sm:$0xff] %v2787_v61  ;;  %3679 = vst [vmem:[#allocation19_spill] sm:$0xff] %v2791_v2  ;;  %v227_v22 = vld [vmem:[#allocation2 + $0x5d0] sm:$0xff]  ;;  %v2796_v24 = vpack.c.bf16 %v228_v59, %v220_v57  ;;  %v234_v27 = vld [vmem:[#allocation2 + $0x608] sm:$0xff]  ;;  %v2804_v45 = vpack.c.bf16 %v225_v13, %v217_v1 }
  0x49   :  { %1737 = vmatpush1.bf16.msra.mxu0 %v2747_v48  ;;  %3680 = vst [vmem:[#allocation20_spill] sm:$0xff] %v2793_v11  ;;  %v242_v28 = vld [vmem:[#allocation2 + $0x648] sm:$0xff]  ;;  %v2798_v29 = vld [vmem:[#allocation5] sm:$0x7]  ;;  %v236_v42 = vld [vmem:[#allocation2 + $0x618] sm:$0xff]  ;;  %v2808_v47 = vpack.c.bf16 %v227_v22, %v219_v19 }
  0x4a   :  { %1833 = vmatpush1.bf16.msra.mxu1 %v2751_v49  ;;  %1739 = vmatprep.subr.bf16.mxu0 %v2753_v53  ;;  %3681 = vst [vmem:[#allocation21_spill] sm:$0xff] %v2796_v24  ;;  %v244_v44 = vld [vmem:[#allocation2 + $0x658] sm:$0xff]  ;;  %v2801_v4 = vrot.slane %v2798_v29, %v433_v60  ;;  %3682 = vst [vmem:[#allocation22_spill] sm:$0xff] %v2804_v45  ;;  %v2810_v54 = vpack.c.bf16 %v242_v28, %v234_v27  ;;  %v233_v55 = vld [vmem:[#allocation2 + $0x600] sm:$0xff] }
  0x4b   :  { %1835 = vmatprep.subr.bf16.mxu1 %v2756_v58  ;;  %3683 = vst [vmem:[#allocation23_spill] sm:$0xff] %v2808_v47  ;;  %v241_v57 = vld [vmem:[#allocation2 + $0x640] sm:$0xff]  ;;  %v235_v59 = vld [vmem:[#allocation2 + $0x610] sm:$0xff]  ;;  %v252_v1 = vld [vmem:[#allocation2 + $0x698] sm:$0xff] }
  0x4c   :  { %3684 = vst [vmem:[#allocation24_spill] sm:$0xff] %v2810_v54  ;;  %v243_v60 = vld [vmem:[#allocation2 + $0x650] sm:$0xff]  ;;  %506 = vmatprep.mubr.f32.mxu0 %v2801_v4  ;;  %v260_v13 = vld [vmem:[#allocation2 + $0x6d8] sm:$0xff]  ;;  %648 = vmatprep.mubr.f32.mxu1 %v2801_v4  ;;  %v2818_v19 = vpack.c.bf16 %v241_v57, %v233_v55  ;;  %v249_v28 = vld [vmem:[#allocation2 + $0x680] sm:$0xff] }
  0x4d   :  { %1741 = vmatpush1.bf16.msra.mxu0 %v2759_v6  ;;  %v2822_v22 = vpack.c.bf16 %v243_v60, %v235_v59  ;;  %v268_v55 = vld [vmem:[#allocation2 + $0x718] sm:$0xff]  ;;  %v265_v59 = vld [vmem:[#allocation2 + $0x700] sm:$0xff] }
  0x4e   :  { %1837 = vmatpush1.bf16.msra.mxu1 %v2763_v9  ;;  %1743 = vmatprep.subr.bf16.mxu0 %v2765_v10  ;;  %3686 = vst [vmem:[#allocation26_spill] sm:$0xff] %v2818_v19  ;;  %v276_v57 = vld [vmem:[#allocation2 + $0x758] sm:$0xff]  ;;  %v273_v60 = vld [vmem:[#allocation2 + $0x740] sm:$0xff] }
  0x4f   :  { %1839 = vmatprep.subr.bf16.mxu1 %v2768_v20  ;;  %3687 = vst [vmem:[#allocation27_spill] sm:$0xff] %v2822_v22 }
  0x51   :  { %1745 = vmatpush1.bf16.msra.mxu0 %v2774_v36  ;;  %v314_v36 = vld [vmem:[#allocation2 + $0x888] sm:$0xff] }
  0x52   :  { %1841 = vmatpush1.bf16.msra.mxu1 %v2778_v37  ;;  %1747 = vmatprep.subr.bf16.mxu0 %v2780_v40  ;;  %v2813_v40 = vpack.c.bf16 %v244_v44, %v236_v42  ;;  %v257_v42 = vld [vmem:[#allocation2 + $0x6c0] sm:$0xff]  ;;  %v251_v44 = vld [vmem:[#allocation2 + $0x690] sm:$0xff] }
  0x53   :  { %1843 = vmatprep.subr.bf16.mxu1 %v2783_v46  ;;  %v250_v46 = vld [vmem:[#allocation2 + $0x688] sm:$0xff] }
  0x54   :  { %3685 = vst [vmem:[#allocation25_spill] sm:$0xff] %v2813_v40 }
  0x55   :  { %1749 = vmatpush1.bf16.msra.mxu0 %v2787_v61  ;;  %v258_v61 = vld [vmem:[#allocation2 + $0x6c8] sm:$0xff] }
  0x56   :  { %1845 = vmatpush1.bf16.msra.mxu1 %v2791_v2  ;;  %1751 = vmatprep.subr.bf16.mxu0 %v2793_v11  ;;  %v2824_v27 = vpack.c.bf16 %v258_v61, %v250_v46  ;;  %v2827_v11 = vpack.c.bf16 %v260_v13, %v252_v1  ;;  %v266_v2 = vld [vmem:[#allocation2 + $0x708] sm:$0xff]  ;;  %v267_v1 = vld [vmem:[#allocation2 + $0x710] sm:$0xff]  ;;  %v2839_v13 = vpack.c.bf16 %v276_v57, %v268_v55 }
  0x57   :  { %1847 = vmatprep.subr.bf16.mxu1 %v2796_v24  ;;  %v259_v24 = vld [vmem:[#allocation2 + $0x6d0] sm:$0xff] }
  0x58   :  { %3688 = vst [vmem:[#allocation28_spill] sm:$0xff] %v2824_v27  ;;  %3689 = vst [vmem:[#allocation29_spill] sm:$0xff] %v2827_v11  ;;  %v2834_v46 = vpack.c.bf16 %v259_v24, %v251_v44  ;;  %v289_v44 = vld [vmem:[#allocation2 + $0x7c0] sm:$0xff]  ;;  %v283_v55 = vld [vmem:[#allocation2 + $0x790] sm:$0xff] }
  0x59   :  { %1753 = vmatpush1.bf16.msra.mxu0 %v2804_v45  ;;  %v274_v45 = vld [vmem:[#allocation2 + $0x748] sm:$0xff]  ;;  %3693 = vst [vmem:[#allocation33_spill] sm:$0xff] %v2839_v13 }
  0x5a   :  { %1849 = vmatpush1.bf16.msra.mxu1 %v2808_v47  ;;  %1755 = vmatprep.subr.bf16.mxu0 %v2810_v54  ;;  %v2830_v47 = vpack.c.bf16 %v257_v42, %v249_v28  ;;  %3691 = vst [vmem:[#allocation31_spill] sm:$0xff] %v2834_v46  ;;  %v2836_v61 = vpack.c.bf16 %v274_v45, %v266_v2  ;;  %v275_v54 = vld [vmem:[#allocation2 + $0x750] sm:$0xff]  ;;  %v284_v28 = vld [vmem:[#allocation2 + $0x798] sm:$0xff]  ;;  %v281_v45 = vld [vmem:[#allocation2 + $0x780] sm:$0xff] }
  0x5b   :  { %1851 = vmatprep.subr.bf16.mxu1 %v2813_v40  ;;  %v282_v40 = vld [vmem:[#allocation2 + $0x788] sm:$0xff]  ;;  %v292_v42 = vld [vmem:[#allocation2 + $0x7d8] sm:$0xff]  ;;  %v2846_v2 = vpack.c.bf16 %v275_v54, %v267_v1  ;;  %v2855_v54 = vpack.c.bf16 %v289_v44, %v281_v45  ;;  %v297_v1 = vld [vmem:[#allocation2 + $0x800] sm:$0xff] }
  0x5c   :  { %3690 = vst [vmem:[#allocation30_spill] sm:$0xff] %v2830_v47  ;;  %3692 = vst [vmem:[#allocation32_spill] sm:$0xff] %v2836_v61  ;;  %v2851_v57 = vpack.c.bf16 %v292_v42, %v284_v28  ;;  %v305_v28 = vld [vmem:[#allocation2 + $0x840] sm:$0xff]  ;;  %v299_v42 = vld [vmem:[#allocation2 + $0x810] sm:$0xff] }
  0x5d   :  { %1757 = vmatpush1.bf16.msra.mxu0 %v2818_v19  ;;  %v290_v19 = vld [vmem:[#allocation2 + $0x7c8] sm:$0xff]  ;;  %3695 = vst [vmem:[#allocation35_spill] sm:$0xff] %v2846_v2  ;;  %3698 = vst [vmem:[#allocation38_spill] sm:$0xff] %v2855_v54  ;;  %v316_v44 = vld [vmem:[#allocation2 + $0x898] sm:$0xff] }
  0x5e   :  { %1853 = vmatpush1.bf16.msra.mxu1 %v2822_v22  ;;  %1759 = vmatprep.subr.bf16.mxu0 %v2824_v27  ;;  %v2842_v22 = vpack.c.bf16 %v273_v60, %v265_v59  ;;  %v2848_v24 = vpack.c.bf16 %v290_v19, %v282_v40  ;;  %3697 = vst [vmem:[#allocation37_spill] sm:$0xff] %v2851_v57  ;;  %v291_v27 = vld [vmem:[#allocation2 + $0x7d0] sm:$0xff]  ;;  %v300_v59 = vld [vmem:[#allocation2 + $0x818] sm:$0xff] }
  0x5f   :  { %1855 = vmatprep.subr.bf16.mxu1 %v2827_v11  ;;  %v298_v11 = vld [vmem:[#allocation2 + $0x808] sm:$0xff]  ;;  %v308_v60 = vld [vmem:[#allocation2 + $0x858] sm:$0xff]  ;;  %v2859_v40 = vpack.c.bf16 %v291_v27, %v283_v55  ;;  %v2870_v27 = vpack.c.bf16 %v305_v28, %v297_v1  ;;  %v313_v55 = vld [vmem:[#allocation2 + $0x880] sm:$0xff] }
  0x60   :  { %3694 = vst [vmem:[#allocation34_spill] sm:$0xff] %v2842_v22  ;;  %3696 = vst [vmem:[#allocation36_spill] sm:$0xff] %v2848_v24  ;;  %v332_v1 = vld [vmem:[#allocation2 + $0x918] sm:$0xff] }
  0x61   :  { %1761 = vmatpush1.bf16.msra.mxu0 %v2830_v47  ;;  %v306_v47 = vld [vmem:[#allocation2 + $0x848] sm:$0xff]  ;;  %3699 = vst [vmem:[#allocation39_spill] sm:$0xff] %v2859_v40  ;;  %3702 = vst [vmem:[#allocation42_spill] sm:$0xff] %v2870_v27  ;;  %v340_v28 = vld [vmem:[#allocation2 + $0x958] sm:$0xff] }
  0x62   :  { %1857 = vmatpush1.bf16.msra.mxu1 %v2834_v46  ;;  %1763 = vmatprep.subr.bf16.mxu0 %v2836_v61  ;;  %v429_v46 = vsub.s32 0, %v2771_v31  ;;  %v2861_v19 = vpack.c.bf16 %v306_v47, %v298_v11  ;;  %v2864_v61 = vpack.c.bf16 %v308_v60, %v300_v59  ;;  %v321_v59 = vld [vmem:[#allocation2 + $0x8c0] sm:$0xff]  ;;  %v315_v60 = vld [vmem:[#allocation2 + $0x890] sm:$0xff] }
  0x63   :  { %1859 = vmatprep.subr.bf16.mxu1 %v2839_v13  ;;  %v307_v13 = vld [vmem:[#allocation2 + $0x850] sm:$0xff] }
  0x64   :  { %3700 = vst [vmem:[#allocation40_spill] sm:$0xff] %v2861_v19  ;;  %3701 = vst [vmem:[#allocation41_spill] sm:$0xff] %v2864_v61  ;;  %v2867_v45 = vrot.slane %v2798_v29, %v429_v46  ;;  %v2874_v11 = vpack.c.bf16 %v307_v13, %v299_v42  ;;  %v337_v42 = vld [vmem:[#allocation2 + $0x940] sm:$0xff] }
  0x65   :  { %1765 = vmatpush1.bf16.msra.mxu0 %v2842_v22  ;;  %v322_v22 = vld [vmem:[#allocation2 + $0x8c8] sm:$0xff] }
  0x66   :  { %1861 = vmatpush1.bf16.msra.mxu1 %v2846_v2  ;;  %1767 = vmatprep.subr.bf16.mxu0 %v2848_v24  ;;  %v324_v2 = vld [vmem:[#allocation2 + $0x8d8] sm:$0xff]  ;;  %3703 = vst [vmem:[#allocation43_spill] sm:$0xff] %v2874_v11  ;;  %v2876_v47 = vpack.c.bf16 %v322_v22, %v314_v36  ;;  %v323_v24 = vld [vmem:[#allocation2 + $0x8d0] sm:$0xff]  ;;  %v2884_v36 = vpack.c.bf16 %v321_v59, %v313_v55  ;;  %v3562_v55 = vmov 0.0  }
  0x67   :  { %1863 = vmatprep.subr.bf16.mxu1 %v2851_v57  ;;  %v2879_v46 = vpack.c.bf16 %v324_v2, %v316_v44  ;;  %v330_v57 = vld [vmem:[#allocation2 + $0x908] sm:$0xff]  ;;  %v2888_v22 = vpack.c.bf16 %v323_v24, %v315_v60  ;;  %v329_v2 = vld [vmem:[#allocation2 + $0x900] sm:$0xff]  ;;  %v331_v44 = vld [vmem:[#allocation2 + $0x910] sm:$0xff] }
  0x68   :  { %3704 = vst [vmem:[#allocation44_spill] sm:$0xff] %v2876_v47  ;;  %3706 = vst [vmem:[#allocation46_spill] sm:$0xff] %v2884_v36  ;;  %v348_v59 = vld [vmem:[#allocation2 + $0x998] sm:$0xff]  ;;  %v2898_v24 = vpack.c.bf16 %v337_v42, %v329_v2  ;;  %v345_v60 = vld [vmem:[#allocation2 + $0x980] sm:$0xff] }
  0x69   :  { %1769 = vmatpush1.bf16.msra.mxu0 %v2855_v54  ;;  %3705 = vst [vmem:[#allocation45_spill] sm:$0xff] %v2879_v46  ;;  %v338_v54 = vld [vmem:[#allocation2 + $0x948] sm:$0xff]  ;;  %3707 = vst [vmem:[#allocation47_spill] sm:$0xff] %v2888_v22  ;;  %v364_v2 = vld [vmem:[#allocation2 + $0xa18] sm:$0xff] }
  0x6a   :  { %1865 = vmatpush1.bf16.msra.mxu1 %v2859_v40  ;;  %1771 = vmatprep.subr.bf16.mxu0 %v2861_v19  ;;  %v2890_v13 = vpack.c.bf16 %v338_v54, %v330_v57  ;;  %v346_v19 = vld [vmem:[#allocation2 + $0x988] sm:$0xff]  ;;  %3710 = vst [vmem:[#allocation50_spill] sm:$0xff] %v2898_v24  ;;  %v372_v42 = vld [vmem:[#allocation2 + $0xa58] sm:$0xff] }
  0x6b   :  { %1867 = vmatprep.subr.bf16.mxu1 %v2864_v61  ;;  %v2893_v61 = vpack.c.bf16 %v340_v28, %v332_v1  ;;  %v354_v40 = vld [vmem:[#allocation2 + $0x9c8] sm:$0xff]  ;;  %v353_v1 = vld [vmem:[#allocation2 + $0x9c0] sm:$0xff]  ;;  %v347_v28 = vld [vmem:[#allocation2 + $0x990] sm:$0xff] }
  0x6c   :  { %507 = vmatmul.mubr.f32.vlgmr.msra.gmra.mrb[0].mxu0 %v2867_v45  ;;  %3708 = vst [vmem:[#allocation48_spill] sm:$0xff] %v2890_v13  ;;  %v2904_v54 = vpack.c.bf16 %v354_v40, %v346_v19 }
  0x6d   :  { %1773 = vmatpush1.bf16.msra.mxu0 %v2870_v27  ;;  %649 = vmatmul.mubr.f32.vlgmr.msra.gmra.mrb[0].mxu1 %v2867_v45  ;;  %3709 = vst [vmem:[#allocation49_spill] sm:$0xff] %v2893_v61  ;;  %v339_v27 = vld [vmem:[#allocation2 + $0x950] sm:$0xff] }
  0x6e   :  { %1869 = vmatpush1.bf16.msra.mxu1 %v2874_v11  ;;  %1775 = vmatprep.subr.bf16.mxu0 %v2876_v47  ;;  %v356_v11 = vld [vmem:[#allocation2 + $0x9d8] sm:$0xff]  ;;  %v2902_v57 = vpack.c.bf16 %v339_v27, %v331_v44  ;;  %3712 = vst [vmem:[#allocation52_spill] sm:$0xff] %v2904_v54  ;;  %v362_v47 = vld [vmem:[#allocation2 + $0xa08] sm:$0xff]  ;;  %v361_v27 = vld [vmem:[#allocation2 + $0xa00] sm:$0xff] }
  0x6f   :  { %1871 = vmatprep.subr.bf16.mxu1 %v2879_v46  ;;  %577 = vmatprep.mubr.f32.mxu0 %v3562_v55  ;;  %v2907_v46 = vpack.c.bf16 %v356_v11, %v348_v59  ;;  %v369_v11 = vld [vmem:[#allocation2 + $0xa40] sm:$0xff]  ;;  %v363_v44 = vld [vmem:[#allocation2 + $0xa10] sm:$0xff]  ;;  %v2919_v59 = vpack.c.bf16 %v372_v42, %v364_v2 }
  0x70   :  { %719 = vmatprep.mubr.f32.mxu1 %v3562_v55  ;;  %3711 = vst [vmem:[#allocation51_spill] sm:$0xff] %v2902_v57  ;;  %v355_v55 = vld [vmem:[#allocation2 + $0x9d0] sm:$0xff] }
  0x71   :  { %1777 = vmatpush1.bf16.msra.mxu0 %v2884_v36  ;;  %3713 = vst [vmem:[#allocation53_spill] sm:$0xff] %v2907_v46  ;;  %v370_v36 = vld [vmem:[#allocation2 + $0xa48] sm:$0xff]  ;;  %v2914_v40 = vpack.c.bf16 %v355_v55, %v347_v28  ;;  %3717 = vst [vmem:[#allocation57_spill] sm:$0xff] %v2919_v59  ;;  %v377_v55 = vld [vmem:[#allocation2 + $0xa80] sm:$0xff] }
  0x72   :  { %1873 = vmatpush1.bf16.msra.mxu1 %v2888_v22  ;;  %1779 = vmatprep.subr.bf16.mxu0 %v2890_v13  ;;  %v2910_v22 = vpack.c.bf16 %v353_v1, %v345_v60  ;;  %v2916_v19 = vpack.c.bf16 %v370_v36, %v362_v47  ;;  %v378_v13 = vld [vmem:[#allocation2 + $0xa88] sm:$0xff]  ;;  %v380_v60 = vld [vmem:[#allocation2 + $0xa98] sm:$0xff]  ;;  %v385_v28 = vld [vmem:[#allocation2 + $0xac0] sm:$0xff] }
  0x73   :  { %1875 = vmatprep.subr.bf16.mxu1 %v2893_v61  ;;  %3715 = vst [vmem:[#allocation55_spill] sm:$0xff] %v2914_v40  ;;  %v371_v61 = vld [vmem:[#allocation2 + $0xa50] sm:$0xff]  ;;  %v388_v1 = vld [vmem:[#allocation2 + $0xad8] sm:$0xff] }
  0x74   :  { %3714 = vst [vmem:[#allocation54_spill] sm:$0xff] %v2910_v22  ;;  %3716 = vst [vmem:[#allocation56_spill] sm:$0xff] %v2916_v19  ;;  %v2926_v47 = vpack.c.bf16 %v371_v61, %v363_v44  ;;  %v379_v2 = vld [vmem:[#allocation2 + $0xa90] sm:$0xff]  ;;  %v2931_v42 = vpack.c.bf16 %v388_v1, %v380_v60  ;;  %v401_v44 = vld [vmem:[#allocation2 + $0xb40] sm:$0xff] }
  0x75   :  { %1781 = vmatpush1.bf16.msra.mxu0 %v2898_v24  ;;  %v386_v24 = vld [vmem:[#allocation2 + $0xac8] sm:$0xff]  ;;  %v395_v60 = vld [vmem:[#allocation2 + $0xb10] sm:$0xff] }
  0x76   :  { %1877 = vmatpush1.bf16.msra.mxu1 %v2902_v57  ;;  %1783 = vmatprep.subr.bf16.mxu0 %v2904_v54  ;;  %v2922_v57 = vpack.c.bf16 %v369_v11, %v361_v27  ;;  %3719 = vst [vmem:[#allocation59_spill] sm:$0xff] %v2926_v47  ;;  %v2928_v36 = vpack.c.bf16 %v386_v24, %v378_v13  ;;  %3721 = vst [vmem:[#allocation61_spill] sm:$0xff] %v2931_v42  ;;  %v394_v54 = vld [vmem:[#allocation2 + $0xb08] sm:$0xff]  ;;  %v396_v27 = vld [vmem:[#allocation2 + $0xb18] sm:$0xff] }
  0x77   :  { %1879 = vmatprep.subr.bf16.mxu1 %v2907_v46  ;;  %v387_v46 = vld [vmem:[#allocation2 + $0xad0] sm:$0xff]  ;;  %v404_v11 = vld [vmem:[#allocation2 + $0xb58] sm:$0xff]  ;;  %v393_v24 = vld [vmem:[#allocation2 + $0xb00] sm:$0xff] }
  0x78   :  { %3718 = vst [vmem:[#allocation58_spill] sm:$0xff] %v2922_v57  ;;  %3720 = vst [vmem:[#allocation60_spill] sm:$0xff] %v2928_v36  ;;  %v2938_v61 = vpack.c.bf16 %v387_v46, %v379_v2  ;;  %v2943_v1 = vpack.c.bf16 %v404_v11, %v396_v27  ;;  %v417_v2 = vld [vmem:[#allocation2 + $0xbc0] sm:$0xff]  ;;  %v411_v27 = vld [vmem:[#allocation2 + $0xb90] sm:$0xff] }
  0x79   :  { %1785 = vmatpush1.bf16.msra.mxu0 %v2910_v22  ;;  %v402_v22 = vld [vmem:[#allocation2 + $0xb48] sm:$0xff] }
  0x7a   :  { %1881 = vmatpush1.bf16.msra.mxu1 %v2914_v40  ;;  %1787 = vmatprep.subr.bf16.mxu0 %v2916_v19  ;;  %v2934_v40 = vpack.c.bf16 %v385_v28, %v377_v55  ;;  %3723 = vst [vmem:[#allocation63_spill] sm:$0xff] %v2938_v61  ;;  %v2940_v13 = vpack.c.bf16 %v402_v22, %v394_v54  ;;  %3725 = vst [vmem:[#allocation65_spill] sm:$0xff] %v2943_v1  ;;  %v410_v19 = vld [vmem:[#allocation2 + $0xb88] sm:$0xff]  ;;  %v412_v55 = vld [vmem:[#allocation2 + $0xb98] sm:$0xff] }
  0x7b   :  { %1883 = vmatprep.subr.bf16.mxu1 %v2919_v59  ;;  %v403_v59 = vld [vmem:[#allocation2 + $0xb50] sm:$0xff]  ;;  %v420_v28 = vld [vmem:[#allocation2 + $0xbd8] sm:$0xff]  ;;  %v409_v54 = vld [vmem:[#allocation2 + $0xb80] sm:$0xff] }
  0x7c   :  { %3722 = vst [vmem:[#allocation62_spill] sm:$0xff] %v2934_v40  ;;  %3724 = vst [vmem:[#allocation64_spill] sm:$0xff] %v2940_v13  ;;  %v2950_v46 = vpack.c.bf16 %v403_v59, %v395_v60  ;;  %v2955_v11 = vpack.c.bf16 %v420_v28, %v412_v55  ;;  %v2959_v59 = vpack.c.bf16 %v417_v2, %v409_v54  ;;  %v45_v60 = vld [vmem:[#allocation2 + $0x20] sm:$0xff]  ;;  %v47_v28 = vld [vmem:[#allocation2 + $0x30] sm:$0xff] }
  0x7d   :  { %1789 = vmatpush1.bf16.msra.mxu0 %v2922_v57  ;;  %v418_v57 = vld [vmem:[#allocation2 + $0xbc8] sm:$0xff]  ;;  %v53_v55 = vld [vmem:[#allocation2 + $0x60] sm:$0xff]  ;;  %v64_v2 = vld [vmem:[#allocation2 + $0xb8] sm:$0xff] }
  0x7e   :  { %1885 = vmatpush1.bf16.msra.mxu1 %v2926_v47  ;;  %1791 = vmatprep.subr.bf16.mxu0 %v2928_v36  ;;  %v2946_v47 = vpack.c.bf16 %v401_v44, %v393_v24  ;;  %3727 = vst [vmem:[#allocation67_spill] sm:$0xff] %v2950_v46  ;;  %v2952_v22 = vpack.c.bf16 %v418_v57, %v410_v19  ;;  %3729 = vst [vmem:[#allocation69_spill] sm:$0xff] %v2955_v11  ;;  %v46_v36 = vld [vmem:[#allocation2 + $0x28] sm:$0xff]  ;;  %v437_v24 = vsub.s32 2, %v2771_v31  ;;  %v48_v44 = vld [vmem:[#allocation2 + $0x38] sm:$0xff] }
  0x7f   :  { %1887 = vmatprep.subr.bf16.mxu1 %v2931_v42  ;;  %v419_v42 = vld [vmem:[#allocation2 + $0xbd0] sm:$0xff]  ;;  %3730 = vst [vmem:[#allocation70_spill] sm:$0xff] %v2959_v59 }
  0x80   :  { %3726 = vst [vmem:[#allocation66_spill] sm:$0xff] %v2946_v47  ;;  %3728 = vst [vmem:[#allocation68_spill] sm:$0xff] %v2952_v22  ;;  %v2963_v57 = vpack.c.bf16 %v419_v42, %v411_v27  ;;  %v2971_v54 = vrot.slane %v2798_v29, %v437_v24  ;;  %v2974_v42 = vpack.c.bf16 %v53_v55, %v45_v60  ;;  %v69_v27 = vld [vmem:[#allocation2 + $0xe0] sm:$0xff]  ;;  %v71_v24 = vld [vmem:[#allocation2 + $0xf0] sm:$0xff] }
  0x81   :  { %1793 = vmatpush1.bf16.msra.mxu0 %v2934_v40  ;;  %v54_v40 = vld [vmem:[#allocation2 + $0x68] sm:$0xff]  ;;  %v80_v60 = vld [vmem:[#allocation2 + $0x138] sm:$0xff] }
  0x82   :  { %1889 = vmatpush1.bf16.msra.mxu1 %v2938_v61  ;;  %1795 = vmatprep.subr.bf16.mxu0 %v2940_v13  ;;  %v56_v61 = vld [vmem:[#allocation2 + $0x78] sm:$0xff]  ;;  %3731 = vst [vmem:[#allocation71_spill] sm:$0xff] %v2963_v57  ;;  %v2965_v19 = vpack.c.bf16 %v54_v40, %v46_v36  ;;  %v62_v13 = vld [vmem:[#allocation2 + $0xa8] sm:$0xff]  ;;  %3733 = vst [vmem:[#allocation73_spill] sm:$0xff] %v2974_v42 }
  0x83   :  { %1891 = vmatprep.subr.bf16.mxu1 %v2943_v1  ;;  %v2968_v31 = vpack.c.bf16 %v56_v61, %v48_v44  ;;  %v55_v1 = vld [vmem:[#allocation2 + $0x70] sm:$0xff]  ;;  %v61_v61 = vld [vmem:[#allocation2 + $0xa0] sm:$0xff]  ;;  %v88_v55 = vld [vmem:[#allocation2 + $0x178] sm:$0xff] }
  0x84   :  { %v2978_v40 = vpack.c.bf16 %v55_v1, %v47_v28  ;;  %v63_v44 = vld [vmem:[#allocation2 + $0xb0] sm:$0xff]  ;;  %v85_v28 = vld [vmem:[#allocation2 + $0x160] sm:$0xff] }
  0x85   :  { %1797 = vmatpush1.bf16.msra.mxu0 %v2946_v47  ;;  %3732 = vst [vmem:[#allocation72_spill] sm:$0xff] %v2968_v31  ;;  %v70_v47 = vld [vmem:[#allocation2 + $0xe8] sm:$0xff] }
  0x86   :  { %1893 = vmatpush1.bf16.msra.mxu1 %v2950_v46  ;;  %1799 = vmatprep.subr.bf16.mxu0 %v2952_v22  ;;  %v72_v46 = vld [vmem:[#allocation2 + $0xf8] sm:$0xff]  ;;  %3734 = vst [vmem:[#allocation74_spill] sm:$0xff] %v2978_v40  ;;  %v2980_v36 = vpack.c.bf16 %v70_v47, %v62_v13  ;;  %v2988_v47 = vpack.c.bf16 %v69_v27, %v61_v61  ;;  %v94_v22 = vld [vmem:[#allocation2 + $0x1a8] sm:$0xff] }
  0x87   :  { %1895 = vmatprep.subr.bf16.mxu1 %v2955_v11  ;;  %v2983_v29 = vpack.c.bf16 %v72_v46, %v64_v2  ;;  %v78_v11 = vld [vmem:[#allocation2 + $0x128] sm:$0xff]  ;;  %v2992_v13 = vpack.c.bf16 %v71_v24, %v63_v44  ;;  %v77_v46 = vld [vmem:[#allocation2 + $0x120] sm:$0xff]  ;;  %v79_v2 = vld [vmem:[#allocation2 + $0x130] sm:$0xff] }
  0x88   :  { %3736 = vst [vmem:[#allocation76_spill] sm:$0xff] %v2988_v47  ;;  %v96_v61 = vld [vmem:[#allocation2 + $0x1b8] sm:$0xff]  ;;  %v93_v24 = vld [vmem:[#allocation2 + $0x1a0] sm:$0xff] }
  0x89   :  { %1801 = vmatpush1.bf16.msra.mxu0 %v2959_v59  ;;  %3735 = vst [vmem:[#allocation75_spill] sm:$0xff] %v2983_v29  ;;  %v86_v59 = vld [vmem:[#allocation2 + $0x168] sm:$0xff]  ;;  %3737 = vst [vmem:[#allocation77_spill] sm:$0xff] %v2992_v13  ;;  %v104_v27 = vld [vmem:[#allocation2 + $0x1f8] sm:$0xff] }
  0x8a   :  { %1897 = vmatpush1.bf16.msra.mxu1 %v2963_v57  ;;  %1899 = vmatprep.subr.bf16.mxu0 %v2965_v19  ;;  %v2994_v1 = vpack.c.bf16 %v86_v59, %v78_v11  ;;  %v87_v57 = vld [vmem:[#allocation2 + $0x170] sm:$0xff]  ;;  %v3002_v11 = vpack.c.bf16 %v85_v28, %v77_v46  ;;  %v112_v46 = vld [vmem:[#allocation2 + $0x238] sm:$0xff] }
  0x8b   :  { %1995 = vmatprep.subr.bf16.mxu1 %v2968_v31  ;;  %v2997_v31 = vpack.c.bf16 %v88_v55, %v80_v60  ;;  %v3006_v59 = vpack.c.bf16 %v87_v57, %v79_v2  ;;  %v101_v60 = vld [vmem:[#allocation2 + $0x1e0] sm:$0xff]  ;;  %v95_v55 = vld [vmem:[#allocation2 + $0x1b0] sm:$0xff]  ;;  %v120_v28 = vld [vmem:[#allocation2 + $0x278] sm:$0xff] }
  0x8c   :  { %578 = vmatmul.mubr.f32.vlgmr.msra.gmra.mrb[0].mxu0 %v2971_v54  ;;  %3738 = vst [vmem:[#allocation78_spill] sm:$0xff] %v2994_v1  ;;  %3740 = vst [vmem:[#allocation80_spill] sm:$0xff] %v3002_v11  ;;  %v117_v2 = vld [vmem:[#allocation2 + $0x260] sm:$0xff] }
  0x8d   :  { %720 = vmatmul.mubr.f32.vlgmr.msra.gmra.mrb[0].mxu1 %v2971_v54  ;;  %1901 = vmatpush1.bf16.msra.mxu0 %v2974_v42  ;;  %3739 = vst [vmem:[#allocation79_spill] sm:$0xff] %v2997_v31  ;;  %v102_v42 = vld [vmem:[#allocation2 + $0x1e8] sm:$0xff]  ;;  %3741 = vst [vmem:[#allocation81_spill] sm:$0xff] %v3006_v59 }
  0x8e   :  { %1997 = vmatpush1.bf16.msra.mxu1 %v2978_v40  ;;  %1903 = vmatprep.subr.bf16.mxu0 %v2980_v36  ;;  %v3008_v44 = vpack.c.bf16 %v102_v42, %v94_v22  ;;  %v110_v40 = vld [vmem:[#allocation2 + $0x228] sm:$0xff]  ;;  %v109_v42 = vld [vmem:[#allocation2 + $0x220] sm:$0xff] }
  0x8f   :  { %1999 = vmatprep.subr.bf16.mxu1 %v2983_v29  ;;  %790 = vmatprep.mubr.f32.mxu0 %v2801_v4  ;;  %v3011_v29 = vpack.c.bf16 %v104_v27, %v96_v61  ;;  %v111_v61 = vld [vmem:[#allocation2 + $0x230] sm:$0xff]  ;;  %v3023_v27 = vpack.c.bf16 %v120_v28, %v112_v46 }
  0x90   :  { %932 = vmatprep.mubr.f32.mxu1 %v2801_v4  ;;  %3742 = vst [vmem:[#allocation82_spill] sm:$0xff] %v3008_v44  ;;  %v103_v4 = vld [vmem:[#allocation2 + $0x1f0] sm:$0xff] }
  0x91   :  { %1905 = vmatpush1.bf16.msra.mxu0 %v2988_v47  ;;  %3743 = vst [vmem:[#allocation83_spill] sm:$0xff] %v3011_v29  ;;  %v118_v47 = vld [vmem:[#allocation2 + $0x268] sm:$0xff]  ;;  %v3018_v22 = vpack.c.bf16 %v103_v4, %v95_v55  ;;  %3747 = vst [vmem:[#allocation87_spill] sm:$0xff] %v3023_v27  ;;  %v125_v55 = vld [vmem:[#allocation2 + $0x2a0] sm:$0xff] }
  0x92   :  { %2001 = vmatpush1.bf16.msra.mxu1 %v2992_v13  ;;  %1907 = vmatprep.subr.bf16.mxu0 %v2994_v1  ;;  %v3014_v13 = vpack.c.bf16 %v101_v60, %v93_v24  ;;  %v3020_v57 = vpack.c.bf16 %v118_v47, %v110_v40  ;;  %v126_v1 = vld [vmem:[#allocation2 + $0x2a8] sm:$0xff]  ;;  %v128_v24 = vld [vmem:[#allocation2 + $0x2b8] sm:$0xff]  ;;  %v133_v4 = vld [vmem:[#allocation2 + $0x2e0] sm:$0xff] }
  0x93   :  { %2003 = vmatprep.subr.bf16.mxu1 %v2997_v31  ;;  %3745 = vst [vmem:[#allocation85_spill] sm:$0xff] %v3018_v22  ;;  %v119_v31 = vld [vmem:[#allocation2 + $0x270] sm:$0xff]  ;;  %v136_v60 = vld [vmem:[#allocation2 + $0x2f8] sm:$0xff] }
  0x94   :  { %3744 = vst [vmem:[#allocation84_spill] sm:$0xff] %v3014_v13  ;;  %3746 = vst [vmem:[#allocation86_spill] sm:$0xff] %v3020_v57  ;;  %v3030_v40 = vpack.c.bf16 %v119_v31, %v111_v61  ;;  %v127_v46 = vld [vmem:[#allocation2 + $0x2b0] sm:$0xff]  ;;  %v3035_v28 = vpack.c.bf16 %v136_v60, %v128_v24  ;;  %v149_v61 = vld [vmem:[#allocation2 + $0x360] sm:$0xff] }
  0x95   :  { %1909 = vmatpush1.bf16.msra.mxu0 %v3002_v11  ;;  %v134_v11 = vld [vmem:[#allocation2 + $0x2e8] sm:$0xff]  ;;  %v143_v24 = vld [vmem:[#allocation2 + $0x330] sm:$0xff] }
  0x96   :  { %2005 = vmatpush1.bf16.msra.mxu1 %v3006_v59  ;;  %1911 = vmatprep.subr.bf16.mxu0 %v3008_v44  ;;  %v3026_v59 = vpack.c.bf16 %v117_v2, %v109_v42  ;;  %3749 = vst [vmem:[#allocation89_spill] sm:$0xff] %v3030_v40  ;;  %v3032_v47 = vpack.c.bf16 %v134_v11, %v126_v1  ;;  %3751 = vst [vmem:[#allocation91_spill] sm:$0xff] %v3035_v28  ;;  %v142_v44 = vld [vmem:[#allocation2 + $0x328] sm:$0xff]  ;;  %v144_v42 = vld [vmem:[#allocation2 + $0x338] sm:$0xff] }
  0x97   :  { %2007 = vmatprep.subr.bf16.mxu1 %v3011_v29  ;;  %v135_v29 = vld [vmem:[#allocation2 + $0x2f0] sm:$0xff]  ;;  %v152_v2 = vld [vmem:[#allocation2 + $0x378] sm:$0xff]  ;;  %v141_v11 = vld [vmem:[#allocation2 + $0x320] sm:$0xff] }
  0x98   :  { %3748 = vst [vmem:[#allocation88_spill] sm:$0xff] %v3026_v59  ;;  %3750 = vst [vmem:[#allocation90_spill] sm:$0xff] %v3032_v47  ;;  %v3042_v31 = vpack.c.bf16 %v135_v29, %v127_v46  ;;  %v3047_v60 = vpack.c.bf16 %v152_v2, %v144_v42  ;;  %v165_v46 = vld [vmem:[#allocation2 + $0x3e0] sm:$0xff]  ;;  %v159_v42 = vld [vmem:[#allocation2 + $0x3b0] sm:$0xff] }
  0x99   :  { %1913 = vmatpush1.bf16.msra.mxu0 %v3014_v13  ;;  %v150_v13 = vld [vmem:[#allocation2 + $0x368] sm:$0xff] }
  0x9a   :  { %2009 = vmatpush1.bf16.msra.mxu1 %v3018_v22  ;;  %1915 = vmatprep.subr.bf16.mxu0 %v3020_v57  ;;  %v3038_v22 = vpack.c.bf16 %v133_v4, %v125_v55  ;;  %3753 = vst [vmem:[#allocation93_spill] sm:$0xff] %v3042_v31  ;;  %v3044_v1 = vpack.c.bf16 %v150_v13, %v142_v44  ;;  %3755 = vst [vmem:[#allocation95_spill] sm:$0xff] %v3047_v60  ;;  %v158_v57 = vld [vmem:[#allocation2 + $0x3a8] sm:$0xff]  ;;  %v160_v55 = vld [vmem:[#allocation2 + $0x3b8] sm:$0xff] }
  0x9b   :  { %2011 = vmatprep.subr.bf16.mxu1 %v3023_v27  ;;  %v151_v27 = vld [vmem:[#allocation2 + $0x370] sm:$0xff]  ;;  %v168_v4 = vld [vmem:[#allocation2 + $0x3f8] sm:$0xff]  ;;  %v157_v44 = vld [vmem:[#allocation2 + $0x3a0] sm:$0xff] }
  0x9c   :  { %3752 = vst [vmem:[#allocation92_spill] sm:$0xff] %v3038_v22  ;;  %3754 = vst [vmem:[#allocation94_spill] sm:$0xff] %v3044_v1  ;;  %v3054_v29 = vpack.c.bf16 %v151_v27, %v143_v24  ;;  %v3059_v2 = vpack.c.bf16 %v168_v4, %v160_v55  ;;  %v173_v27 = vld [vmem:[#allocation2 + $0x420] sm:$0xff]  ;;  %v175_v55 = vld [vmem:[#allocation2 + $0x430] sm:$0xff] }
  0x9d   :  { %1917 = vmatpush1.bf16.msra.mxu0 %v3026_v59  ;;  %v166_v59 = vld [vmem:[#allocation2 + $0x3e8] sm:$0xff]  ;;  %v181_v24 = vld [vmem:[#allocation2 + $0x460] sm:$0xff] }
  0x9e   :  { %2013 = vmatpush1.bf16.msra.mxu1 %v3030_v40  ;;  %1919 = vmatprep.subr.bf16.mxu0 %v3032_v47  ;;  %v3050_v40 = vpack.c.bf16 %v149_v61, %v141_v11  ;;  %3757 = vst [vmem:[#allocation97_spill] sm:$0xff] %v3054_v29  ;;  %v3056_v13 = vpack.c.bf16 %v166_v59, %v158_v57  ;;  %3759 = vst [vmem:[#allocation99_spill] sm:$0xff] %v3059_v2  ;;  %v174_v47 = vld [vmem:[#allocation2 + $0x428] sm:$0xff]  ;;  %v176_v11 = vld [vmem:[#allocation2 + $0x438] sm:$0xff] }
  0x9f   :  { %2015 = vmatprep.subr.bf16.mxu1 %v3035_v28  ;;  %v167_v28 = vld [vmem:[#allocation2 + $0x3f0] sm:$0xff]  ;;  %v184_v61 = vld [vmem:[#allocation2 + $0x478] sm:$0xff] }
  0xa0   :  { %3756 = vst [vmem:[#allocation96_spill] sm:$0xff] %v3050_v40  ;;  %3758 = vst [vmem:[#allocation98_spill] sm:$0xff] %v3056_v13  ;;  %v3066_v59 = vpack.c.bf16 %v167_v28, %v159_v42  ;;  %v3071_v4 = vpack.c.bf16 %v184_v61, %v176_v11  ;;  %v189_v28 = vld [vmem:[#allocation2 + $0x4a0] sm:$0xff]  ;;  %v191_v11 = vld [vmem:[#allocation2 + $0x4b0] sm:$0xff] }
  0xa1   :  { %1921 = vmatpush1.bf16.msra.mxu0 %v3038_v22  ;;  %v182_v22 = vld [vmem:[#allocation2 + $0x468] sm:$0xff]  ;;  %v197_v42 = vld [vmem:[#allocation2 + $0x4e0] sm:$0xff] }
  0xa2   :  { %2017 = vmatpush1.bf16.msra.mxu1 %v3042_v31  ;;  %1923 = vmatprep.subr.bf16.mxu0 %v3044_v1  ;;  %v3062_v31 = vpack.c.bf16 %v165_v46, %v157_v44  ;;  %3761 = vst [vmem:[#allocation101_spill] sm:$0xff] %v3066_v59  ;;  %v3068_v57 = vpack.c.bf16 %v182_v22, %v174_v47  ;;  %3763 = vst [vmem:[#allocation103_spill] sm:$0xff] %v3071_v4  ;;  %v190_v1 = vld [vmem:[#allocation2 + $0x4a8] sm:$0xff]  ;;  %v192_v44 = vld [vmem:[#allocation2 + $0x4b8] sm:$0xff] }
  0xa3   :  { %2019 = vmatprep.subr.bf16.mxu1 %v3047_v60  ;;  %v183_v60 = vld [vmem:[#allocation2 + $0x470] sm:$0xff]  ;;  %v200_v46 = vld [vmem:[#allocation2 + $0x4f8] sm:$0xff] }
  0xa4   :  { %3760 = vst [vmem:[#allocation100_spill] sm:$0xff] %v3062_v31  ;;  %3762 = vst [vmem:[#allocation102_spill] sm:$0xff] %v3068_v57  ;;  %v3078_v22 = vpack.c.bf16 %v183_v60, %v175_v55  ;;  %v3083_v61 = vpack.c.bf16 %v200_v46, %v192_v44  ;;  %v205_v60 = vld [vmem:[#allocation2 + $0x520] sm:$0xff]  ;;  %v207_v44 = vld [vmem:[#allocation2 + $0x530] sm:$0xff] }
  0xa5   :  { %1925 = vmatpush1.bf16.msra.mxu0 %v3050_v40  ;;  %v198_v40 = vld [vmem:[#allocation2 + $0x4e8] sm:$0xff]  ;;  %v213_v55 = vld [vmem:[#allocation2 + $0x560] sm:$0xff] }
  0xa6   :  { %2021 = vmatpush1.bf16.msra.mxu1 %v3054_v29  ;;  %1927 = vmatprep.subr.bf16.mxu0 %v3056_v13  ;;  %v3074_v29 = vpack.c.bf16 %v181_v24, %v173_v27  ;;  %3765 = vst [vmem:[#allocation105_spill] sm:$0xff] %v3078_v22  ;;  %v3080_v47 = vpack.c.bf16 %v198_v40, %v190_v1  ;;  %3767 = vst [vmem:[#allocation107_spill] sm:$0xff] %v3083_v61  ;;  %v206_v13 = vld [vmem:[#allocation2 + $0x528] sm:$0xff]  ;;  %v208_v27 = vld [vmem:[#allocation2 + $0x538] sm:$0xff] }
  0xa7   :  { %2023 = vmatprep.subr.bf16.mxu1 %v3059_v2  ;;  %v199_v2 = vld [vmem:[#allocation2 + $0x4f0] sm:$0xff]  ;;  %v216_v24 = vld [vmem:[#allocation2 + $0x578] sm:$0xff] }
  0xa8   :  { %3764 = vst [vmem:[#allocation104_spill] sm:$0xff] %v3074_v29  ;;  %3766 = vst [vmem:[#allocation106_spill] sm:$0xff] %v3080_v47  ;;  %v3090_v40 = vpack.c.bf16 %v199_v2, %v191_v11  ;;  %v3095_v46 = vpack.c.bf16 %v216_v24, %v208_v27  ;;  %v221_v2 = vld [vmem:[#allocation2 + $0x5a0] sm:$0xff]  ;;  %v223_v27 = vld [vmem:[#allocation2 + $0x5b0] sm:$0xff] }
  0xa9   :  { %1929 = vmatpush1.bf16.msra.mxu0 %v3062_v31  ;;  %v214_v31 = vld [vmem:[#allocation2 + $0x568] sm:$0xff]  ;;  %v229_v11 = vld [vmem:[#allocation2 + $0x5e0] sm:$0xff] }
  0xaa   :  { %2025 = vmatpush1.bf16.msra.mxu1 %v3066_v59  ;;  %1931 = vmatprep.subr.bf16.mxu0 %v3068_v57  ;;  %v3086_v59 = vpack.c.bf16 %v197_v42, %v189_v28  ;;  %3769 = vst [vmem:[#allocation109_spill] sm:$0xff] %v3090_v40  ;;  %v3092_v1 = vpack.c.bf16 %v214_v31, %v206_v13  ;;  %3771 = vst [vmem:[#allocation111_spill] sm:$0xff] %v3095_v46  ;;  %v222_v57 = vld [vmem:[#allocation2 + $0x5a8] sm:$0xff]  ;;  %v224_v28 = vld [vmem:[#allocation2 + $0x5b8] sm:$0xff] }
  0xab   :  { %2027 = vmatprep.subr.bf16.mxu1 %v3071_v4  ;;  %v215_v4 = vld [vmem:[#allocation2 + $0x570] sm:$0xff]  ;;  %v232_v42 = vld [vmem:[#allocation2 + $0x5f8] sm:$0xff] }
  0xac   :  { %3768 = vst [vmem:[#allocation108_spill] sm:$0xff] %v3086_v59  ;;  %3770 = vst [vmem:[#allocation110_spill] sm:$0xff] %v3092_v1  ;;  %v3102_v31 = vpack.c.bf16 %v215_v4, %v207_v44  ;;  %v3107_v24 = vpack.c.bf16 %v232_v42, %v224_v28  ;;  %v237_v4 = vld [vmem:[#allocation2 + $0x620] sm:$0xff]  ;;  %v239_v28 = vld [vmem:[#allocation2 + $0x630] sm:$0xff] }
  0xad   :  { %1933 = vmatpush1.bf16.msra.mxu0 %v3074_v29  ;;  %v230_v29 = vld [vmem:[#allocation2 + $0x5e8] sm:$0xff]  ;;  %v245_v44 = vld [vmem:[#allocation2 + $0x660] sm:$0xff] }
  0xae   :  { %2029 = vmatpush1.bf16.msra.mxu1 %v3078_v22  ;;  %1935 = vmatprep.subr.bf16.mxu0 %v3080_v47  ;;  %v3098_v22 = vpack.c.bf16 %v213_v55, %v205_v60  ;;  %3773 = vst [vmem:[#allocation113_spill] sm:$0xff] %v3102_v31  ;;  %v3104_v13 = vpack.c.bf16 %v230_v29, %v222_v57  ;;  %3775 = vst [vmem:[#allocation115_spill] sm:$0xff] %v3107_v24  ;;  %v238_v47 = vld [vmem:[#allocation2 + $0x628] sm:$0xff]  ;;  %v240_v60 = vld [vmem:[#allocation2 + $0x638] sm:$0xff] }
  0xaf   :  { %2031 = vmatprep.subr.bf16.mxu1 %v3083_v61  ;;  %v231_v61 = vld [vmem:[#allocation2 + $0x5f0] sm:$0xff]  ;;  %v248_v55 = vld [vmem:[#allocation2 + $0x678] sm:$0xff] }
  0xb0   :  { %3772 = vst [vmem:[#allocation112_spill] sm:$0xff] %v3098_v22  ;;  %3774 = vst [vmem:[#allocation114_spill] sm:$0xff] %v3104_v13  ;;  %v3114_v29 = vpack.c.bf16 %v231_v61, %v223_v27  ;;  %v3119_v42 = vpack.c.bf16 %v248_v55, %v240_v60  ;;  %v253_v61 = vld [vmem:[#allocation2 + $0x6a0] sm:$0xff]  ;;  %v255_v60 = vld [vmem:[#allocation2 + $0x6b0] sm:$0xff] }
  0xb1   :  { %1937 = vmatpush1.bf16.msra.mxu0 %v3086_v59  ;;  %v246_v59 = vld [vmem:[#allocation2 + $0x668] sm:$0xff]  ;;  %v261_v27 = vld [vmem:[#allocation2 + $0x6e0] sm:$0xff] }
  0xb2   :  { %2033 = vmatpush1.bf16.msra.mxu1 %v3090_v40  ;;  %1939 = vmatprep.subr.bf16.mxu0 %v3092_v1  ;;  %v3110_v40 = vpack.c.bf16 %v229_v11, %v221_v2  ;;  %3777 = vst [vmem:[#allocation117_spill] sm:$0xff] %v3114_v29  ;;  %v3116_v57 = vpack.c.bf16 %v246_v59, %v238_v47  ;;  %3779 = vst [vmem:[#allocation119_spill] sm:$0xff] %v3119_v42  ;;  %v254_v1 = vld [vmem:[#allocation2 + $0x6a8] sm:$0xff]  ;;  %v256_v2 = vld [vmem:[#allocation2 + $0x6b8] sm:$0xff] }
  0xb3   :  { %2035 = vmatprep.subr.bf16.mxu1 %v3095_v46  ;;  %v247_v46 = vld [vmem:[#allocation2 + $0x670] sm:$0xff]  ;;  %v264_v11 = vld [vmem:[#allocation2 + $0x6f8] sm:$0xff] }
  0xb4   :  { %3776 = vst [vmem:[#allocation116_spill] sm:$0xff] %v3110_v40  ;;  %3778 = vst [vmem:[#allocation118_spill] sm:$0xff] %v3116_v57  ;;  %v3126_v59 = vpack.c.bf16 %v247_v46, %v239_v28  ;;  %v3131_v55 = vpack.c.bf16 %v264_v11, %v256_v2  ;;  %v269_v46 = vld [vmem:[#allocation2 + $0x720] sm:$0xff]  ;;  %v271_v2 = vld [vmem:[#allocation2 + $0x730] sm:$0xff] }
  0xb5   :  { %1941 = vmatpush1.bf16.msra.mxu0 %v3098_v22  ;;  %v262_v22 = vld [vmem:[#allocation2 + $0x6e8] sm:$0xff]  ;;  %v277_v28 = vld [vmem:[#allocation2 + $0x760] sm:$0xff] }
  0xb6   :  { %2037 = vmatpush1.bf16.msra.mxu1 %v3102_v31  ;;  %1943 = vmatprep.subr.bf16.mxu0 %v3104_v13  ;;  %v3122_v31 = vpack.c.bf16 %v245_v44, %v237_v4  ;;  %3781 = vst [vmem:[#allocation121_spill] sm:$0xff] %v3126_v59  ;;  %v3128_v47 = vpack.c.bf16 %v262_v22, %v254_v1  ;;  %3783 = vst [vmem:[#allocation123_spill] sm:$0xff] %v3131_v55  ;;  %v270_v13 = vld [vmem:[#allocation2 + $0x728] sm:$0xff]  ;;  %v272_v4 = vld [vmem:[#allocation2 + $0x738] sm:$0xff] }
  0xb7   :  { %2039 = vmatprep.subr.bf16.mxu1 %v3107_v24  ;;  %v263_v24 = vld [vmem:[#allocation2 + $0x6f0] sm:$0xff]  ;;  %v280_v44 = vld [vmem:[#allocation2 + $0x778] sm:$0xff] }
  0xb8   :  { %3780 = vst [vmem:[#allocation120_spill] sm:$0xff] %v3122_v31  ;;  %3782 = vst [vmem:[#allocation122_spill] sm:$0xff] %v3128_v47  ;;  %v3138_v22 = vpack.c.bf16 %v263_v24, %v255_v60  ;;  %v3143_v11 = vpack.c.bf16 %v280_v44, %v272_v4  ;;  %v285_v24 = vld [vmem:[#allocation2 + $0x7a0] sm:$0xff]  ;;  %v287_v4 = vld [vmem:[#allocation2 + $0x7b0] sm:$0xff] }
  0xb9   :  { %1945 = vmatpush1.bf16.msra.mxu0 %v3110_v40  ;;  %v278_v40 = vld [vmem:[#allocation2 + $0x768] sm:$0xff]  ;;  %v293_v60 = vld [vmem:[#allocation2 + $0x7e0] sm:$0xff] }
  0xba   :  { %2041 = vmatpush1.bf16.msra.mxu1 %v3114_v29  ;;  %1947 = vmatprep.subr.bf16.mxu0 %v3116_v57  ;;  %v3134_v29 = vpack.c.bf16 %v261_v27, %v253_v61  ;;  %3785 = vst [vmem:[#allocation125_spill] sm:$0xff] %v3138_v22  ;;  %v3140_v1 = vpack.c.bf16 %v278_v40, %v270_v13  ;;  %3787 = vst [vmem:[#allocation127_spill] sm:$0xff] %v3143_v11  ;;  %v286_v57 = vld [vmem:[#allocation2 + $0x7a8] sm:$0xff]  ;;  %v288_v61 = vld [vmem:[#allocation2 + $0x7b8] sm:$0xff] }
  0xbb   :  { %2043 = vmatprep.subr.bf16.mxu1 %v3119_v42  ;;  %v279_v42 = vld [vmem:[#allocation2 + $0x770] sm:$0xff]  ;;  %v296_v27 = vld [vmem:[#allocation2 + $0x7f8] sm:$0xff] }
  0xbc   :  { %3784 = vst [vmem:[#allocation124_spill] sm:$0xff] %v3134_v29  ;;  %3786 = vst [vmem:[#allocation126_spill] sm:$0xff] %v3140_v1  ;;  %v3150_v40 = vpack.c.bf16 %v279_v42, %v271_v2  ;;  %v3155_v44 = vpack.c.bf16 %v296_v27, %v288_v61  ;;  %v301_v42 = vld [vmem:[#allocation2 + $0x820] sm:$0xff]  ;;  %v303_v61 = vld [vmem:[#allocation2 + $0x830] sm:$0xff] }
  0xbd   :  { %1949 = vmatpush1.bf16.msra.mxu0 %v3122_v31  ;;  %v294_v31 = vld [vmem:[#allocation2 + $0x7e8] sm:$0xff]  ;;  %v309_v2 = vld [vmem:[#allocation2 + $0x860] sm:$0xff] }
  0xbe   :  { %2045 = vmatpush1.bf16.msra.mxu1 %v3126_v59  ;;  %1951 = vmatprep.subr.bf16.mxu0 %v3128_v47  ;;  %v3146_v59 = vpack.c.bf16 %v277_v28, %v269_v46  ;;  %3789 = vst [vmem:[#allocation129_spill] sm:$0xff] %v3150_v40  ;;  %v3152_v13 = vpack.c.bf16 %v294_v31, %v286_v57  ;;  %3791 = vst [vmem:[#allocation131_spill] sm:$0xff] %v3155_v44  ;;  %v302_v47 = vld [vmem:[#allocation2 + $0x828] sm:$0xff]  ;;  %v304_v46 = vld [vmem:[#allocation2 + $0x838] sm:$0xff] }
  0xbf   :  { %2047 = vmatprep.subr.bf16.mxu1 %v3131_v55  ;;  %v295_v55 = vld [vmem:[#allocation2 + $0x7f0] sm:$0xff]  ;;  %v312_v28 = vld [vmem:[#allocation2 + $0x878] sm:$0xff] }
  0xc0   :  { %3788 = vst [vmem:[#allocation128_spill] sm:$0xff] %v3146_v59  ;;  %3790 = vst [vmem:[#allocation130_spill] sm:$0xff] %v3152_v13  ;;  %v3162_v31 = vpack.c.bf16 %v295_v55, %v287_v4  ;;  %v3167_v27 = vpack.c.bf16 %v312_v28, %v304_v46  ;;  %v317_v55 = vld [vmem:[#allocation2 + $0x8a0] sm:$0xff]  ;;  %v319_v46 = vld [vmem:[#allocation2 + $0x8b0] sm:$0xff] }
  0xc1   :  { %1953 = vmatpush1.bf16.msra.mxu0 %v3134_v29  ;;  %v310_v29 = vld [vmem:[#allocation2 + $0x868] sm:$0xff]  ;;  %v325_v4 = vld [vmem:[#allocation2 + $0x8e0] sm:$0xff] }
  0xc2   :  { %2049 = vmatpush1.bf16.msra.mxu1 %v3138_v22  ;;  %1955 = vmatprep.subr.bf16.mxu0 %v3140_v1  ;;  %v3158_v22 = vpack.c.bf16 %v293_v60, %v285_v24  ;;  %3793 = vst [vmem:[#allocation133_spill] sm:$0xff] %v3162_v31  ;;  %v3164_v57 = vpack.c.bf16 %v310_v29, %v302_v47  ;;  %3794 = vst [vmem:[#allocation134_spill] sm:$0xff] %v3167_v27  ;;  %v318_v1 = vld [vmem:[#allocation2 + $0x8a8] sm:$0xff]  ;;  %v320_v24 = vld [vmem:[#allocation2 + $0x8b8] sm:$0xff] }
  0xc3   :  { %2051 = vmatprep.subr.bf16.mxu1 %v3143_v11  ;;  %v311_v11 = vld [vmem:[#allocation2 + $0x870] sm:$0xff]  ;;  %v328_v60 = vld [vmem:[#allocation2 + $0x8f8] sm:$0xff] }
  0xc4   :  { %3792 = vst [vmem:[#allocation132_spill] sm:$0xff] %v3158_v22  ;;  %v3174_v29 = vpack.c.bf16 %v311_v11, %v303_v61  ;;  %v3179_v28 = vpack.c.bf16 %v328_v60, %v320_v24  ;;  %v333_v61 = vld [vmem:[#allocation2 + $0x920] sm:$0xff]  ;;  %v335_v60 = vld [vmem:[#allocation2 + $0x930] sm:$0xff] }
  0xc5   :  { %1957 = vmatpush1.bf16.msra.mxu0 %v3146_v59  ;;  %v326_v59 = vld [vmem:[#allocation2 + $0x8e8] sm:$0xff]  ;;  %v341_v24 = vld [vmem:[#allocation2 + $0x960] sm:$0xff] }
  0xc6   :  { %2053 = vmatpush1.bf16.msra.mxu1 %v3150_v40  ;;  %1959 = vmatprep.subr.bf16.mxu0 %v3152_v13  ;;  %v3170_v40 = vpack.c.bf16 %v309_v2, %v301_v42  ;;  %3796 = vst [vmem:[#allocation136_spill] sm:$0xff] %v3174_v29  ;;  %v3176_v47 = vpack.c.bf16 %v326_v59, %v318_v1  ;;  %3798 = vst [vmem:[#allocation138_spill] sm:$0xff] %v3179_v28  ;;  %v334_v13 = vld [vmem:[#allocation2 + $0x928] sm:$0xff]  ;;  %v336_v42 = vld [vmem:[#allocation2 + $0x938] sm:$0xff] }
  0xc7   :  { %2055 = vmatprep.subr.bf16.mxu1 %v3155_v44  ;;  %v327_v44 = vld [vmem:[#allocation2 + $0x8f0] sm:$0xff]  ;;  %v344_v2 = vld [vmem:[#allocation2 + $0x978] sm:$0xff]  ;;  %v3184_v59 = vpack.c.bf16 %v325_v4, %v317_v55  ;;  %v3803_v55 = vmov 0.0  }
  0xc8   :  { %3795 = vst [vmem:[#allocation135_spill] sm:$0xff] %v3170_v40  ;;  %3797 = vst [vmem:[#allocation137_spill] sm:$0xff] %v3176_v47  ;;  %v3188_v1 = vpack.c.bf16 %v327_v44, %v319_v46  ;;  %v352_v4 = vld [vmem:[#allocation2 + $0x9b8] sm:$0xff]  ;;  %v349_v46 = vld [vmem:[#allocation2 + $0x9a0] sm:$0xff] }
  0xc9   :  { %1961 = vmatpush1.bf16.msra.mxu0 %v3158_v22  ;;  %v342_v22 = vld [vmem:[#allocation2 + $0x968] sm:$0xff]  ;;  %3799 = vst [vmem:[#allocation139_spill] sm:$0xff] %v3184_v59 }
  0xca   :  { %2057 = vmatpush1.bf16.msra.mxu1 %v3162_v31  ;;  %1963 = vmatprep.subr.bf16.mxu0 %v3164_v57  ;;  %3800 = vst [vmem:[#allocation140_spill] sm:$0xff] %v3188_v1  ;;  %v3190_v11 = vpack.c.bf16 %v342_v22, %v334_v13  ;;  %v3193_v31 = vpack.c.bf16 %v344_v2, %v336_v42  ;;  %v357_v42 = vld [vmem:[#allocation2 + $0x9e0] sm:$0xff]  ;;  %v351_v2 = vld [vmem:[#allocation2 + $0x9b0] sm:$0xff] }
  0xcb   :  { %2059 = vmatprep.subr.bf16.mxu1 %v3167_v27  ;;  %v343_v27 = vld [vmem:[#allocation2 + $0x970] sm:$0xff]  ;;  %v3198_v22 = vpack.c.bf16 %v341_v24, %v333_v61  ;;  %v368_v61 = vld [vmem:[#allocation2 + $0xa38] sm:$0xff] }
  0xcc   :  { %791 = vmatmul.mubr.f32.vlgmr.msra.gmra.mrb[2].mxu0 %v2867_v45  ;;  %3801 = vst [vmem:[#allocation141_spill] sm:$0xff] %v3190_v11  ;;  %3802 = vst [vmem:[#allocation142_spill] sm:$0xff] %v3193_v31  ;;  %v3202_v13 = vpack.c.bf16 %v343_v27, %v335_v60  ;;  %v376_v24 = vld [vmem:[#allocation2 + $0xa78] sm:$0xff]  ;;  %v365_v60 = vld [vmem:[#allocation2 + $0xa20] sm:$0xff] }
  0xcd   :  { %1965 = vmatpush1.bf16.msra.mxu0 %v3170_v40  ;;  %933 = vmatmul.mubr.f32.vlgmr.msra.gmra.mrb[2].mxu1 %v2867_v45  ;;  %v350_v40 = vld [vmem:[#allocation2 + $0x9a8] sm:$0xff]  ;;  %3804 = vst [vmem:[#allocation143_spill] sm:$0xff] %v3198_v22 }
  0xce   :  { %2061 = vmatpush1.bf16.msra.mxu1 %v3174_v29  ;;  %1967 = vmatprep.subr.bf16.mxu0 %v3176_v47  ;;  %v358_v45 = vld [vmem:[#allocation2 + $0x9e8] sm:$0xff]  ;;  %v360_v29 = vld [vmem:[#allocation2 + $0x9f8] sm:$0xff]  ;;  %3805 = vst [vmem:[#allocation144_spill] sm:$0xff] %v3202_v13 }
  0xcf   :  { %2063 = vmatprep.subr.bf16.mxu1 %v3179_v28  ;;  %861 = vmatprep.mubr.f32.mxu0 %v3803_v55  ;;  %v3204_v44 = vpack.c.bf16 %v358_v45, %v350_v40  ;;  %v3207_v28 = vpack.c.bf16 %v360_v29, %v352_v4  ;;  %v366_v47 = vld [vmem:[#allocation2 + $0xa28] sm:$0xff]  ;;  %v373_v29 = vld [vmem:[#allocation2 + $0xa60] sm:$0xff]  ;;  %v367_v45 = vld [vmem:[#allocation2 + $0xa30] sm:$0xff]  ;;  %v3219_v4 = vpack.c.bf16 %v376_v24, %v368_v61 }
  0xd0   :  { %1003 = vmatprep.mubr.f32.mxu1 %v3803_v55  ;;  %v359_v55 = vld [vmem:[#allocation2 + $0x9f0] sm:$0xff] }
  0xd1   :  { %1969 = vmatpush1.bf16.msra.mxu0 %v3184_v59  ;;  %3806 = vst [vmem:[#allocation145_spill] sm:$0xff] %v3204_v44  ;;  %3807 = vst [vmem:[#allocation146_spill] sm:$0xff] %v3207_v28  ;;  %v374_v59 = vld [vmem:[#allocation2 + $0xa68] sm:$0xff]  ;;  %v3214_v40 = vpack.c.bf16 %v359_v55, %v351_v2  ;;  %v381_v2 = vld [vmem:[#allocation2 + $0xaa0] sm:$0xff] }
  0xd2   :  { %2065 = vmatpush1.bf16.msra.mxu1 %v3188_v1  ;;  %1971 = vmatprep.subr.bf16.mxu0 %v3190_v11  ;;  %v3210_v1 = vpack.c.bf16 %v357_v42, %v349_v46  ;;  %v3216_v27 = vpack.c.bf16 %v374_v59, %v366_v47  ;;  %3811 = vst [vmem:[#allocation150_spill] sm:$0xff] %v3219_v4  ;;  %v382_v11 = vld [vmem:[#allocation2 + $0xaa8] sm:$0xff]  ;;  %v384_v46 = vld [vmem:[#allocation2 + $0xab8] sm:$0xff]  ;;  %v389_v55 = vld [vmem:[#allocation2 + $0xae0] sm:$0xff] }
  0xd3   :  { %2067 = vmatprep.subr.bf16.mxu1 %v3193_v31  ;;  %3809 = vst [vmem:[#allocation148_spill] sm:$0xff] %v3214_v40  ;;  %v375_v31 = vld [vmem:[#allocation2 + $0xa70] sm:$0xff]  ;;  %v392_v42 = vld [vmem:[#allocation2 + $0xaf8] sm:$0xff] }
  0xd4   :  { %3808 = vst [vmem:[#allocation147_spill] sm:$0xff] %v3210_v1  ;;  %3810 = vst [vmem:[#allocation149_spill] sm:$0xff] %v3216_v27  ;;  %v3226_v47 = vpack.c.bf16 %v375_v31, %v367_v45  ;;  %v383_v61 = vld [vmem:[#allocation2 + $0xab0] sm:$0xff]  ;;  %v3231_v24 = vpack.c.bf16 %v392_v42, %v384_v46  ;;  %v405_v45 = vld [vmem:[#allocation2 + $0xb60] sm:$0xff] }
  0xd5   :  { %1973 = vmatpush1.bf16.msra.mxu0 %v3198_v22  ;;  %v390_v22 = vld [vmem:[#allocation2 + $0xae8] sm:$0xff]  ;;  %v399_v46 = vld [vmem:[#allocation2 + $0xb30] sm:$0xff] }
  0xd6   :  { %2069 = vmatpush1.bf16.msra.mxu1 %v3202_v13  ;;  %1975 = vmatprep.subr.bf16.mxu0 %v3204_v44  ;;  %v3222_v13 = vpack.c.bf16 %v373_v29, %v365_v60  ;;  %3813 = vst [vmem:[#allocation152_spill] sm:$0xff] %v3226_v47  ;;  %v3228_v59 = vpack.c.bf16 %v390_v22, %v382_v11  ;;  %3814 = vst [vmem:[#allocation153_spill] sm:$0xff] %v3231_v24  ;;  %v398_v44 = vld [vmem:[#allocation2 + $0xb28] sm:$0xff]  ;;  %v400_v60 = vld [vmem:[#allocation2 + $0xb38] sm:$0xff] }
  0xd7   :  { %2071 = vmatprep.subr.bf16.mxu1 %v3207_v28  ;;  %v391_v28 = vld [vmem:[#allocation2 + $0xaf0] sm:$0xff]  ;;  %v408_v29 = vld [vmem:[#allocation2 + $0xb78] sm:$0xff]  ;;  %v397_v22 = vld [vmem:[#allocation2 + $0xb20] sm:$0xff] }
  0xd8   :  { %3812 = vst [vmem:[#allocation151_spill] sm:$0xff] %v3222_v13  ;;  %v3238_v31 = vpack.c.bf16 %v391_v28, %v383_v61  ;;  %v3243_v42 = vpack.c.bf16 %v408_v29, %v400_v60  ;;  %v421_v61 = vld [vmem:[#allocation2 + $0xbe0] sm:$0xff]  ;;  %v415_v29 = vld [vmem:[#allocation2 + $0xbb0] sm:$0xff] }
  0xd9   :  { %1977 = vmatpush1.bf16.msra.mxu0 %v3210_v1  ;;  %v406_v1 = vld [vmem:[#allocation2 + $0xb68] sm:$0xff] }
  0xda   :  { %2073 = vmatpush1.bf16.msra.mxu1 %v3214_v40  ;;  %1979 = vmatprep.subr.bf16.mxu0 %v3216_v27  ;;  %v3234_v40 = vpack.c.bf16 %v389_v55, %v381_v2  ;;  %v3240_v11 = vpack.c.bf16 %v406_v1, %v398_v44  ;;  %v414_v27 = vld [vmem:[#allocation2 + $0xba8] sm:$0xff]  ;;  %v416_v2 = vld [vmem:[#allocation2 + $0xbb8] sm:$0xff]  ;;  %v413_v44 = vld [vmem:[#allocation2 + $0xba0] sm:$0xff] }
  0xdb   :  { %2075 = vmatprep.subr.bf16.mxu1 %v3219_v4  ;;  %v407_v4 = vld [vmem:[#allocation2 + $0xb70] sm:$0xff]  ;;  %v424_v55 = vld [vmem:[#allocation2 + $0xbf8] sm:$0xff] }
  0xdc   :  { %v3250_v28 = vpack.c.bf16 %v407_v4, %v399_v46  ;;  %v3255_v60 = vpack.c.bf16 %v424_v55, %v416_v2 }
  0xdd   :  { %1981 = vmatpush1.bf16.msra.mxu0 %v3222_v13  ;;  %v422_v13 = vld [vmem:[#allocation2 + $0xbe8] sm:$0xff] }
  0xde   :  { %2077 = vmatpush1.bf16.msra.mxu1 %v3226_v47  ;;  %1983 = vmatprep.subr.bf16.mxu0 %v3228_v59  ;;  %v3246_v47 = vpack.c.bf16 %v405_v45, %v397_v22  ;;  %v3252_v1 = vpack.c.bf16 %v422_v13, %v414_v27  ;;  %v3258_v22 = vpack.c.bf16 %v421_v61, %v413_v44  ;;  %v3840_v13 = vld [vmem:[#allocation40_spill] sm:$0xff] }
  0xdf   :  { %2079 = vmatprep.subr.bf16.mxu1 %v3231_v24  ;;  %v423_v24 = vld [vmem:[#allocation2 + $0xbf0] sm:$0xff] }
  0xe0   :  { %v3262_v4 = vpack.c.bf16 %v423_v24, %v415_v29 }
  0xe1   :  { %1985 = vmatpush1.bf16.msra.mxu0 %v3234_v40 }
  0xe2   :  { %2081 = vmatpush1.bf16.msra.mxu1 %v3238_v31  ;;  %1987 = vmatprep.subr.bf16.mxu0 %v3240_v11 }
  0xe3   :  { %2083 = vmatprep.subr.bf16.mxu1 %v3243_v42 }
  0xe5   :  { %1989 = vmatpush1.bf16.msra.mxu0 %v3246_v47 }
  0xe6   :  { %2085 = vmatpush1.bf16.msra.mxu1 %v3250_v28  ;;  %1991 = vmatprep.subr.bf16.mxu0 %v3252_v1 }
  0xe7   :  { %2087 = vmatprep.subr.bf16.mxu1 %v3255_v60 }
  0xe9   :  { %1993 = vmatpush1.bf16.msra.mxu0 %v3258_v22 }
  0xea   :  { %2089 = vmatpush1.bf16.msra.mxu1 %v3262_v4  ;;  %2155 = vmatprep.subr.bf16.mxu0 %v2662_v7  ;;  %v3816_v7 = vld [vmem:[#allocation17_spill] sm:$0xff] }
  0xeb   :  { %2091 = vmatprep.subr.bf16.mxu1 %v2660_v3  ;;  %v3815_v3 = vld [vmem:[#allocation15_spill] sm:$0xff] }
  0xec   :  { %862 = vmatmul.mubr.f32.vlgmr.msra.gmra.mrb[2].mxu0 %v2971_v54 }
  0xed   :  { %1004 = vmatmul.mubr.f32.vlgmr.msra.gmra.mrb[2].mxu1 %v2971_v54  ;;  %v3839_v54 = vld [vmem:[#allocation38_spill] sm:$0xff] }
  0xf2   :  { %2157 = vmatpush1.bf16.xpose.msra.mxu0 %v2667_v12  ;;  %v3818_v12 = vld [vmem:[#allocation19_spill] sm:$0xff] }
  0xf3   :  { %2093 = vmatpush1.bf16.xpose.msra.mxu1 %v2664_v8  ;;  %2159 = vmatprep.subr.bf16.mxu0 %v2673_v17  ;;  %v3817_v8 = vld [vmem:[#allocation16_spill] sm:$0xff]  ;;  %v3820_v17 = vld [vmem:[#allocation21_spill] sm:$0xff] }
  0xf4   :  { %2095 = vmatprep.subr.bf16.mxu1 %v2671_v16  ;;  %v3819_v16 = vld [vmem:[#allocation18_spill] sm:$0xff] }
  0xfa   :  { %2161 = vmatpush1.bf16.xpose.msra.mxu0 %v2680_v25  ;;  %v3822_v25 = vld [vmem:[#allocation23_spill] sm:$0xff] }
  0xfb   :  { %2097 = vmatpush1.bf16.xpose.msra.mxu1 %v2676_v21  ;;  %2163 = vmatprep.subr.bf16.mxu0 %v2684_v30  ;;  %v3821_v21 = vld [vmem:[#allocation20_spill] sm:$0xff]  ;;  %v3824_v30 = vld [vmem:[#allocation25_spill] sm:$0xff] }
  0xfc   :  { %2099 = vmatprep.subr.bf16.mxu1 %v2682_v26  ;;  %v3823_v26 = vld [vmem:[#allocation22_spill] sm:$0xff] }
 0x102   :  { %2165 = vmatpush1.bf16.xpose.msra.mxu0 %v2691_v38  ;;  %v3826_v38 = vld [vmem:[#allocation27_spill] sm:$0xff] }
 0x103   :  { %2101 = vmatpush1.bf16.xpose.msra.mxu1 %v2687_v34  ;;  %2167 = vmatprep.subr.bf16.mxu0 %v2696_v43  ;;  %v3825_v34 = vld [vmem:[#allocation24_spill] sm:$0xff]  ;;  %v3828_v43 = vld [vmem:[#allocation29_spill] sm:$0xff] }
 0x104   :  { %2103 = vmatprep.subr.bf16.mxu1 %v2693_v39  ;;  %v3827_v39 = vld [vmem:[#allocation26_spill] sm:$0xff] }
 0x10a   :  { %2169 = vmatpush1.bf16.xpose.msra.mxu0 %v2703_v51  ;;  %v3830_v51 = vld [vmem:[#allocation31_spill] sm:$0xff] }
 0x10b   :  { %2105 = vmatpush1.bf16.xpose.msra.mxu1 %v2699_v50  ;;  %2171 = vmatprep.subr.bf16.mxu0 %v2708_v56  ;;  %v3829_v50 = vld [vmem:[#allocation28_spill] sm:$0xff]  ;;  %v3832_v56 = vld [vmem:[#allocation33_spill] sm:$0xff] }
 0x10c   :  { %2107 = vmatprep.subr.bf16.mxu1 %v2705_v52  ;;  %v3831_v52 = vld [vmem:[#allocation30_spill] sm:$0xff] }
 0x112   :  { %2173 = vmatpush1.bf16.xpose.msra.mxu0 %v2715_v63 }
 0x113   :  { %2109 = vmatpush1.bf16.xpose.msra.mxu1 %v2711_v62  ;;  %2175 = vmatprep.subr.bf16.mxu0 %v2720_v5  ;;  %v3833_v62 = vld [vmem:[#allocation32_spill] sm:$0xff] }
 0x114   :  { %2111 = vmatprep.subr.bf16.mxu1 %v2717_v0 }
 0x11a   :  { %2177 = vmatpush1.bf16.xpose.msra.mxu0 %v2727_v15 }
 0x11b   :  { %2113 = vmatpush1.bf16.xpose.msra.mxu1 %v2723_v14  ;;  %2179 = vmatprep.subr.bf16.mxu0 %v2732_v23 }
 0x11c   :  { %2115 = vmatprep.subr.bf16.mxu1 %v2729_v18 }
 0x122   :  { %2181 = vmatpush1.bf16.xpose.msra.mxu0 %v2739_v33  ;;  %v3834_v33 = vld [vmem:[#allocation35_spill] sm:$0xff] }
 0x123   :  { %2117 = vmatpush1.bf16.xpose.msra.mxu1 %v2735_v32  ;;  %2183 = vmatprep.subr.bf16.mxu0 %v2744_v41 }
 0x124   :  { %2119 = vmatprep.subr.bf16.mxu1 %v2741_v35 }
 0x12a   :  { %2185 = vmatpush1.bf16.xpose.msra.mxu0 %v2751_v49  ;;  %v3836_v49 = vld [vmem:[#allocation37_spill] sm:$0xff] }
 0x12b   :  { %2121 = vmatpush1.bf16.xpose.msra.mxu1 %v2747_v48  ;;  %2187 = vmatprep.subr.bf16.mxu0 %v2756_v58  ;;  %v3835_v48 = vld [vmem:[#allocation34_spill] sm:$0xff]  ;;  %v3837_v58 = vld [vmem:[#allocation36_spill] sm:$0xff] }
 0x12c   :  { %2123 = vmatprep.subr.bf16.mxu1 %v2753_v53 }
 0x132   :  { %2189 = vmatpush1.bf16.xpose.msra.mxu0 %v2763_v9 }
 0x133   :  { %2125 = vmatpush1.bf16.xpose.msra.mxu1 %v2759_v6  ;;  %2191 = vmatprep.subr.bf16.mxu0 %v2768_v20 }
 0x134   :  { %2127 = vmatprep.subr.bf16.mxu1 %v2765_v10 }
 0x13a   :  { %2193 = vmatpush1.bf16.xpose.msra.mxu0 %v2778_v37  ;;  %v3838_v37 = vld [vmem:[#allocation39_spill] sm:$0xff] }
 0x13b   :  { %2129 = vmatpush1.bf16.xpose.msra.mxu1 %v3815_v3  ;;  %2195 = vmatprep.subr.bf16.mxu0 %v3816_v7 }
 0x13c   :  { %2131 = vmatprep.subr.bf16.mxu1 %v3817_v8 }
 0x142   :  { %2197 = vmatpush1.bf16.xpose.msra.mxu0 %v3818_v12 }
 0x143   :  { %2133 = vmatpush1.bf16.xpose.msra.mxu1 %v3819_v16  ;;  %2199 = vmatprep.subr.bf16.mxu0 %v3820_v17 }
 0x144   :  { %2135 = vmatprep.subr.bf16.mxu1 %v3821_v21 }
 0x14a   :  { %2201 = vmatpush1.bf16.xpose.msra.mxu0 %v3822_v25 }
 0x14b   :  { %2137 = vmatpush1.bf16.xpose.msra.mxu1 %v3823_v26  ;;  %2203 = vmatprep.subr.bf16.mxu0 %v3824_v30 }
 0x14c   :  { %2139 = vmatprep.subr.bf16.mxu1 %v3825_v34 }
 0x152   :  { %2205 = vmatpush1.bf16.xpose.msra.mxu0 %v3826_v38 }
 0x153   :  { %2141 = vmatpush1.bf16.xpose.msra.mxu1 %v3827_v39  ;;  %2207 = vmatprep.subr.bf16.mxu0 %v3828_v43 }
 0x154   :  { %2143 = vmatprep.subr.bf16.mxu1 %v3829_v50 }
 0x15a   :  { %2209 = vmatpush1.bf16.xpose.msra.mxu0 %v3830_v51 }
 0x15b   :  { %2145 = vmatpush1.bf16.xpose.msra.mxu1 %v3831_v52  ;;  %2211 = vmatprep.subr.bf16.mxu0 %v3832_v56 }
 0x15c   :  { %2147 = vmatprep.subr.bf16.mxu1 %v3833_v62 }
 0x15f   :  { %v579_v63 = vpop.f32.mrb[0].mxu0 }
 0x160   :  { %v1010_v0 = vmul.f32 %v579_v63, %v579_v63  ;;  %v721_v5 = vpop.f32.mrb[0].mxu1  ;;  %v581_v14 = vpop.f32.mrb[1].mxu0 }
 0x161   :  { %v1012_v15 = vmul.f32 %v721_v5, %v721_v5  ;;  %v1011_v18 = vmul.f32 %v581_v14, %v581_v14  ;;  %v723_v23 = vpop.f32.mrb[1].mxu1 }
 0x162   :  { %v1019_v32 = vsel %vm1018_vm0, %v1010_v0, 0.0  ;;  %2213 = vmatpush1.bf16.xpose.msra.mxu0 %v3834_v33  ;;  %v1013_v41 = vmul.f32 %v723_v23, %v723_v23  ;;  %v3846_v33 = vld [vmem:[#allocation78_spill] sm:$0xff] }
 0x163   :  { %v1020_v35 = vsel %vm1018_vm0, %v1011_v18, 0.0  ;;  %2149 = vmatpush1.bf16.xpose.msra.mxu1 %v3835_v48  ;;  %2215 = vmatprep.subr.bf16.mxu0 %v3836_v49  ;;  %v1022_v6 = vsel %vm1018_vm0, %v1012_v15, 0.0  ;;  %v3849_v48 = vld [vmem:[#allocation50_spill] sm:$0xff] }
 0x164   :  { %v1021_v53 = vadd.f32 %v1020_v35, %v1019_v32  ;;  %2151 = vmatprep.subr.bf16.mxu1 %v3837_v58  ;;  %v1024_v10 = vsel %vm1018_vm0, %v1013_v41, 0.0  ;;  %v3841_v32 = vld [vmem:[#allocation73_spill] sm:$0xff]  ;;  %v3847_v35 = vld [vmem:[#allocation48_spill] sm:$0xff]  ;;  %v3850_v49 = vld [vmem:[#allocation82_spill] sm:$0xff] }
 0x165   :  { %v3848_v41 = vld [vmem:[#allocation80_spill] sm:$0xff] }
 0x166   :  { %v1023_v9 = vadd.f32 %v1022_v6, %v1021_v53  ;;  %v3851_v53 = vld [vmem:[#allocation52_spill] sm:$0xff]  ;;  %v3854_v6 = vld [vmem:[#allocation86_spill] sm:$0xff] }
 0x167   :  { %v3852_v58 = vld [vmem:[#allocation84_spill] sm:$0xff] }
 0x168   :  { %v1025_v20 = vadd.f32 %v1024_v10, %v1023_v9  ;;  %v3855_v9 = vld [vmem:[#allocation56_spill] sm:$0xff] }
 0x169   :  { %v3856_v10 = vld [vmem:[#allocation88_spill] sm:$0xff] }
 0x16a   :  { %2217 = vmatpush1.bf16.xpose.msra.mxu0 %v3838_v37  ;;  %v3858_v37 = vld [vmem:[#allocation90_spill] sm:$0xff] }
 0x16b   :  { %2153 = vmatpush1.bf16.xpose.msra.mxu1 %v3839_v54  ;;  %2219 = vmatprep.subr.bf16.mxu0 %v2965_v19  ;;  %v3859_v54 = vld [vmem:[#allocation60_spill] sm:$0xff] }
 0x16c   :  { %2347 = vmatprep.subr.bf16.mxu1 %v3840_v13  ;;  %v3860_v13 = vld [vmem:[#allocation92_spill] sm:$0xff] }
 0x1bf   :  { %v863_v27 = vpop.f32.mrb[2].mxu0 }
 0x1c0   :  { %v1014_v24 = vmul.f32 %v863_v27, %v863_v27  ;;  %v1005_v45 = vpop.f32.mrb[2].mxu1  ;;  %v865_v46 = vpop.f32.mrb[3].mxu0 }
 0x1c1   :  { %v1015_v2 = vmul.f32 %v865_v46, %v865_v46  ;;  %v1007_v55 = vpop.f32.mrb[3].mxu1  ;;  %v1016_v61 = vmul.f32 %v1005_v45, %v1005_v45 }
 0x1c2   :  { %v1026_v44 = vsel %vm1018_vm0, %v1014_v24, 0.0  ;;  %v1017_v7 = vmul.f32 %v1007_v55, %v1007_v55  ;;  %v3862_v24 = vld [vmem:[#allocation94_spill] sm:$0xff] }
 0x1c3   :  { %v1027_v29 = vadd.f32 %v1026_v44, %v1025_v20  ;;  %v1028_v3 = vsel %vm1018_vm0, %v1015_v2, 0.0  ;;  %v1030_v12 = vsel %vm1018_vm0, %v1016_v61, 0.0  ;;  %v3857_v20 = vld [vmem:[#allocation58_spill] sm:$0xff]  ;;  %v3867_v44 = vld [vmem:[#allocation68_spill] sm:$0xff] }
 0x1c4   :  { %v1032_v19 = vsel %vm1018_vm0, %v1017_v7, 0.0  ;;  %v3865_v2 = vld [vmem:[#allocation66_spill] sm:$0xff]  ;;  %v3868_v61 = vld [vmem:[#allocation100_spill] sm:$0xff]  ;;  %v3871_v7 = vld [vmem:[#allocation41_spill] sm:$0xff] }
 0x1c5   :  { %v1029_v8 = vadd.f32 %v1028_v3, %v1027_v29  ;;  %v3869_v29 = vld [vmem:[#allocation70_spill] sm:$0xff] }
 0x1c6   :  { %v3870_v3 = vld [vmem:[#allocation102_spill] sm:$0xff] }
 0x1c7   :  { %v1031_v16 = vadd.f32 %v1030_v12, %v1029_v8  ;;  %v3872_v8 = vld [vmem:[#allocation104_spill] sm:$0xff]  ;;  %v3873_v12 = vld [vmem:[#allocation43_spill] sm:$0xff] }
 0x1c9   :  { %v1033_v17 = vadd.f32 %v1032_v19, %v1031_v16  ;;  %v3874_v16 = vld [vmem:[#allocation106_spill] sm:$0xff]  ;;  %v3875_v19 = vld [vmem:[#allocation45_spill] sm:$0xff] }
 0x1cb   :  { %1034 = vadd.xlane.f32.xlu0 %v1033_v17  ;;  %v3876_v17 = vld [vmem:[#allocation108_spill] sm:$0xff] }
 0x258   :  { %v1035_v21 = vpop.xlane.xlu0 %1034 }
 0x259   :  { %2502 = vrsqrt.f32 %v1035_v21  ;;  %vm1038_vm1 = vcmp.eq.f32.partialorder %v1035_v21, inf  ;;  %v1041_v30 = vand.u32 2147483648, %v1035_v21  ;;  %vm1040_vm2 = vcmp.eq.f32.partialorder %v1035_v21, 0.0 }
 0x263   :  { %v2503_v25 = vpop.eup %2502 }
 0x264   :  { %v1037_v26 = vmul.f32 %v2503_v25, %v1035_v21  ;;  %v3878_v25 = vld [vmem:[#allocation110_spill] sm:$0xff] }
 0x266   :  { %v1039_v34 = vsel %vm1038_vm1, %v1035_v21, %v1037_v26  ;;  %v3877_v21 = vld [vmem:[#allocation47_spill] sm:$0xff]  ;;  %v3879_v26 = vld [vmem:[#allocation49_spill] sm:$0xff] }
 0x267   :  { %v1042_v38 = vsel %vm1040_vm2, %v1041_v30, %v1039_v34  ;;  %v3880_v30 = vld [vmem:[#allocation112_spill] sm:$0xff]  ;;  %v3881_v34 = vld [vmem:[#allocation51_spill] sm:$0xff] }
 0x268   :  { %v1043_v39 = vmax.f32 %v1042_v38, 1e-12  ;;  %v3882_v38 = vld [vmem:[#allocation114_spill] sm:$0xff] }
 0x26a   :  { %2504 = vrcp.f32 %v1043_v39  ;;  %v3883_v39 = vld [vmem:[#allocation53_spill] sm:$0xff] }
 0x274   :  { %v2505_v43 = vpop.eup %2504 }
 0x275   :  { %v1046_v50 = vmul.f32 %v2505_v43, %v581_v14  ;;  %v1048_v51 = vmul.f32 %v2505_v43, %v723_v23  ;;  %v1045_v52 = vmul.f32 %v2505_v43, %v579_v63  ;;  %v3343_v56 = vmul.f32 %v2505_v43, %v721_v5  ;;  %v3842_v14 = vld [vmem:[#allocation42_spill] sm:$0xff]  ;;  %v3843_v63 = vld [vmem:[#allocation44_spill] sm:$0xff] }
 0x276   :  { %v3345_v62 = vmul.f32 %v2505_v43, %v863_v27  ;;  %v3347_v0 = vmul.f32 %v2505_v43, %v1007_v55  ;;  %v3349_v15 = vmul.f32 %v2505_v43, %v1005_v45  ;;  %v3352_v18 = vmul.f32 %v2505_v43, %v865_v46  ;;  %v3844_v5 = vld [vmem:[#allocation76_spill] sm:$0xff]  ;;  %v3845_v23 = vld [vmem:[#allocation46_spill] sm:$0xff] }
 0x277   :  { %1117 = vmatprep.mubr.f32.mxu1 %v1046_v50  ;;  %1188 = vmatprep.mubr.f32.mxu0 %v1048_v51  ;;  %v3861_v27 = vld [vmem:[#allocation62_spill] sm:$0xff]  ;;  %v3863_v45 = vld [vmem:[#allocation64_spill] sm:$0xff] }
 0x278   :  { %1118 = vmatmul.mubr.f32.vlgmr.msra.gmra.mrb[4].mxu1 %v1045_v52  ;;  %1189 = vmatmul.mubr.f32.vlgmr.msra.gmra.mrb[4].mxu0 %v3343_v56  ;;  %v3864_v46 = vld [vmem:[#allocation96_spill] sm:$0xff]  ;;  %v3866_v55 = vld [vmem:[#allocation98_spill] sm:$0xff] }
 0x279   :  { %2221 = vmatpush1.bf16.xpose.msra.mxu0 %v3841_v32  ;;  %2349 = vmatpush1.bf16.xpose.msra.mxu1 %v3842_v14  ;;  %v3884_v43 = vld [vmem:[#allocation116_spill] sm:$0xff]  ;;  %v3889_v14 = vld [vmem:[#allocation59_spill] sm:$0xff] }
 0x27a   :  { %1259 = vmatprep.mubr.f32.mxu0 %v3352_v18  ;;  %1401 = vmatprep.mubr.f32.mxu1 %v1046_v50  ;;  %v3885_v50 = vld [vmem:[#allocation55_spill] sm:$0xff]  ;;  %v3888_v32 = vld [vmem:[#allocation120_spill] sm:$0xff] }
 0x27b   :  { %2223 = vmatprep.subr.bf16.mxu0 %v2980_v36  ;;  %2351 = vmatprep.subr.bf16.mxu1 %v3843_v63  ;;  %v3853_v36 = vld [vmem:[#allocation54_spill] sm:$0xff] }
 0x27c   :  { %v3890_v63 = vld [vmem:[#allocation122_spill] sm:$0xff] }
 0x281   :  { %2225 = vmatpush1.bf16.xpose.msra.mxu0 %v3844_v5  ;;  %2353 = vmatpush1.bf16.xpose.msra.mxu1 %v3845_v23  ;;  %v3891_v5 = vld [vmem:[#allocation61_spill] sm:$0xff]  ;;  %v3892_v23 = vld [vmem:[#allocation124_spill] sm:$0xff] }
 0x282   :  { %2227 = vmatprep.subr.bf16.mxu0 %v3846_v33  ;;  %2355 = vmatprep.subr.bf16.mxu1 %v3847_v35  ;;  %v3893_v33 = vld [vmem:[#allocation63_spill] sm:$0xff]  ;;  %v3894_v35 = vld [vmem:[#allocation126_spill] sm:$0xff] }
 0x289   :  { %2229 = vmatpush1.bf16.xpose.msra.mxu0 %v3848_v41  ;;  %2357 = vmatpush1.bf16.xpose.msra.mxu1 %v3849_v48  ;;  %v3895_v41 = vld [vmem:[#allocation65_spill] sm:$0xff]  ;;  %v3896_v48 = vld [vmem:[#allocation128_spill] sm:$0xff] }
 0x28a   :  { %2231 = vmatprep.subr.bf16.mxu0 %v3850_v49  ;;  %2359 = vmatprep.subr.bf16.mxu1 %v3851_v53  ;;  %v3897_v49 = vld [vmem:[#allocation67_spill] sm:$0xff]  ;;  %v3898_v53 = vld [vmem:[#allocation130_spill] sm:$0xff] }
 0x291   :  { %2233 = vmatpush1.bf16.xpose.msra.mxu0 %v3852_v58  ;;  %2361 = vmatpush1.bf16.xpose.msra.mxu1 %v3853_v36  ;;  %v3899_v58 = vld [vmem:[#allocation69_spill] sm:$0xff]  ;;  %v3900_v36 = vld [vmem:[#allocation132_spill] sm:$0xff] }
 0x292   :  { %2235 = vmatprep.subr.bf16.mxu0 %v3854_v6  ;;  %2363 = vmatprep.subr.bf16.mxu1 %v3855_v9  ;;  %v3901_v6 = vld [vmem:[#allocation71_spill] sm:$0xff]  ;;  %v3902_v9 = vld [vmem:[#allocation72_spill] sm:$0xff] }
 0x299   :  { %2237 = vmatpush1.bf16.xpose.msra.mxu0 %v3856_v10  ;;  %2365 = vmatpush1.bf16.xpose.msra.mxu1 %v3857_v20  ;;  %v3903_v10 = vld [vmem:[#allocation74_spill] sm:$0xff]  ;;  %v3904_v20 = vld [vmem:[#allocation135_spill] sm:$0xff] }
 0x29a   :  { %2239 = vmatprep.subr.bf16.mxu0 %v3858_v37  ;;  %2367 = vmatprep.subr.bf16.mxu1 %v3859_v54  ;;  %v3905_v37 = vld [vmem:[#allocation75_spill] sm:$0xff]  ;;  %v3906_v54 = vld [vmem:[#allocation137_spill] sm:$0xff] }
 0x2a1   :  { %2241 = vmatpush1.bf16.xpose.msra.mxu0 %v3860_v13  ;;  %2369 = vmatpush1.bf16.xpose.msra.mxu1 %v3861_v27  ;;  %v3907_v13 = vld [vmem:[#allocation77_spill] sm:$0xff]  ;;  %v3908_v27 = vld [vmem:[#allocation139_spill] sm:$0xff] }
 0x2a2   :  { %2243 = vmatprep.subr.bf16.mxu0 %v3862_v24  ;;  %2371 = vmatprep.subr.bf16.mxu1 %v3863_v45  ;;  %v3910_v24 = vld [vmem:[#allocation141_spill] sm:$0xff]  ;;  %v3912_v45 = vld [vmem:[#allocation143_spill] sm:$0xff] }
 0x2a9   :  { %2245 = vmatpush1.bf16.xpose.msra.mxu0 %v3864_v46  ;;  %2373 = vmatpush1.bf16.xpose.msra.mxu1 %v3865_v2  ;;  %v3913_v46 = vld [vmem:[#allocation83_spill] sm:$0xff]  ;;  %v3914_v2 = vld [vmem:[#allocation145_spill] sm:$0xff] }
 0x2aa   :  { %2247 = vmatprep.subr.bf16.mxu0 %v3866_v55  ;;  %2375 = vmatprep.subr.bf16.mxu1 %v3867_v44  ;;  %v3916_v55 = vld [vmem:[#allocation147_spill] sm:$0xff] }
 0x2ab   :  { %v3917_v44 = vld [vmem:[#allocation87_spill] sm:$0xff] }
 0x2b1   :  { %2249 = vmatpush1.bf16.xpose.msra.mxu0 %v3868_v61  ;;  %2377 = vmatpush1.bf16.xpose.msra.mxu1 %v3869_v29  ;;  %v3918_v61 = vld [vmem:[#allocation149_spill] sm:$0xff] }
 0x2b2   :  { %2251 = vmatprep.subr.bf16.mxu0 %v3870_v3  ;;  %2379 = vmatprep.subr.bf16.mxu1 %v3871_v7  ;;  %v3919_v29 = vld [vmem:[#allocation89_spill] sm:$0xff]  ;;  %v3920_v3 = vld [vmem:[#allocation151_spill] sm:$0xff] }
 0x2b3   :  { %v3921_v7 = vld [vmem:[#allocation91_spill] sm:$0xff] }
 0x2b8   :  { %1402 = vmatmul.mubr.f32.vlgmr.msra.gmra.mrb[6].mxu1 %v1045_v52  ;;  %v3887_v52 = vld [vmem:[#allocation57_spill] sm:$0xff] }
 0x2b9   :  { %2253 = vmatpush1.bf16.xpose.msra.mxu0 %v3872_v8  ;;  %2381 = vmatpush1.bf16.xpose.msra.mxu1 %v3873_v12  ;;  %v3922_v8 = vld [vmem:[#allocation93_spill] sm:$0xff]  ;;  %v3923_v12 = vld [vmem:[#allocation95_spill] sm:$0xff] }
 0x2ba   :  { %1471 = vmatprep.mubr.f32.mxu1 %v1048_v51  ;;  %2255 = vmatprep.subr.bf16.mxu0 %v3874_v16  ;;  %v3886_v51 = vld [vmem:[#allocation118_spill] sm:$0xff]  ;;  %v3924_v16 = vld [vmem:[#allocation97_spill] sm:$0xff] }
 0x2bb   :  { %2383 = vmatprep.subr.bf16.mxu1 %v3875_v19  ;;  %v3925_v19 = vld [vmem:[#allocation99_spill] sm:$0xff] }
 0x2c1   :  { %2257 = vmatpush1.bf16.xpose.msra.mxu0 %v3876_v17  ;;  %2385 = vmatpush1.bf16.xpose.msra.mxu1 %v3877_v21  ;;  %v3926_v17 = vld [vmem:[#allocation101_spill] sm:$0xff]  ;;  %v3928_v21 = vld [vmem:[#allocation134_spill] sm:$0xff] }
 0x2c2   :  { %2259 = vmatprep.subr.bf16.mxu0 %v3878_v25  ;;  %2387 = vmatprep.subr.bf16.mxu1 %v3879_v26  ;;  %v3932_v25 = vld [vmem:[#allocation138_spill] sm:$0xff]  ;;  %v3934_v26 = vld [vmem:[#allocation140_spill] sm:$0xff] }
 0x2c9   :  { %2261 = vmatpush1.bf16.xpose.msra.mxu0 %v3880_v30  ;;  %2389 = vmatpush1.bf16.xpose.msra.mxu1 %v3881_v34  ;;  %v3936_v30 = vld [vmem:[#allocation142_spill] sm:$0xff]  ;;  %v3937_v34 = vld [vmem:[#allocation113_spill] sm:$0xff] }
 0x2ca   :  { %2263 = vmatprep.subr.bf16.mxu0 %v3882_v38  ;;  %2391 = vmatprep.subr.bf16.mxu1 %v3883_v39  ;;  %v3939_v38 = vld [vmem:[#allocation115_spill] sm:$0xff] }
 0x2d1   :  { %2265 = vmatpush1.bf16.xpose.msra.mxu0 %v3884_v43  ;;  %2393 = vmatpush1.bf16.xpose.msra.mxu1 %v3885_v50  ;;  %v3941_v50 = vld [vmem:[#allocation117_spill] sm:$0xff] }
 0x2d2   :  { %2267 = vmatprep.subr.bf16.mxu0 %v3886_v51  ;;  %2395 = vmatprep.subr.bf16.mxu1 %v3887_v52  ;;  %v3942_v51 = vld [vmem:[#allocation148_spill] sm:$0xff]  ;;  %v3943_v52 = vld [vmem:[#allocation119_spill] sm:$0xff] }
 0x2d9   :  { %2269 = vmatpush1.bf16.xpose.msra.mxu0 %v3888_v32  ;;  %2397 = vmatpush1.bf16.xpose.msra.mxu1 %v3889_v14  ;;  %v3944_v32 = vld [vmem:[#allocation150_spill] sm:$0xff]  ;;  %v3945_v14 = vld [vmem:[#allocation121_spill] sm:$0xff] }
 0x2da   :  { %2271 = vmatprep.subr.bf16.mxu0 %v3890_v63  ;;  %2399 = vmatprep.subr.bf16.mxu1 %v3891_v5  ;;  %v3946_v63 = vld [vmem:[#allocation152_spill] sm:$0xff]  ;;  %v3947_v5 = vld [vmem:[#allocation123_spill] sm:$0xff] }
 0x2e1   :  { %2273 = vmatpush1.bf16.xpose.msra.mxu0 %v3892_v23  ;;  %2401 = vmatpush1.bf16.xpose.msra.mxu1 %v3893_v33  ;;  %v3948_v23 = vld [vmem:[#allocation153_spill] sm:$0xff] }
 0x2e2   :  { %2275 = vmatprep.subr.bf16.mxu0 %v3894_v35  ;;  %2403 = vmatprep.subr.bf16.mxu1 %v3895_v41  ;;  %v3949_v33 = vld [vmem:[#allocation125_spill] sm:$0xff]  ;;  %v3950_v35 = vld [vmem:[#allocation127_spill] sm:$0xff] }
 0x2e3   :  { %v3951_v41 = vld [vmem:[#allocation129_spill] sm:$0xff] }
 0x2e9   :  { %2277 = vmatpush1.bf16.xpose.msra.mxu0 %v3896_v48  ;;  %2405 = vmatpush1.bf16.xpose.msra.mxu1 %v3897_v49  ;;  %v3952_v48 = vld [vmem:[#allocation131_spill] sm:$0xff]  ;;  %v3953_v49 = vld [vmem:[#allocation133_spill] sm:$0xff] }
 0x2ea   :  { %2279 = vmatprep.subr.bf16.mxu0 %v3898_v53  ;;  %2407 = vmatprep.subr.bf16.mxu1 %v3899_v58 }
 0x2f1   :  { %2281 = vmatpush1.bf16.xpose.msra.mxu0 %v3900_v36  ;;  %2409 = vmatpush1.bf16.xpose.msra.mxu1 %v3901_v6 }
 0x2f2   :  { %2283 = vmatprep.subr.bf16.mxu0 %v3902_v9  ;;  %2411 = vmatprep.subr.bf16.mxu1 %v3164_v57  ;;  %v3909_v57 = vld [vmem:[#allocation79_spill] sm:$0xff] }
 0x2f8   :  { %1260 = vmatmul.mubr.f32.vlgmr.msra.gmra.mrb[4].mxu0 %v3345_v62  ;;  %1472 = vmatmul.mubr.f32.vlgmr.msra.gmra.mrb[6].mxu1 %v3343_v56  ;;  %v3911_v56 = vld [vmem:[#allocation81_spill] sm:$0xff] }
 0x2f9   :  { %2285 = vmatpush1.bf16.xpose.msra.mxu0 %v3903_v10  ;;  %1330 = vmatprep.mubr.f32.mxu0 %v3347_v0 }
 0x2fa   :  { %2413 = vmatpush1.bf16.xpose.msra.mxu1 %v3904_v20  ;;  %1541 = vmatprep.mubr.f32.mxu1 %v3352_v18  ;;  %v3915_v18 = vld [vmem:[#allocation85_spill] sm:$0xff] }
 0x2fb   :  { %2287 = vmatprep.subr.bf16.mxu0 %v3905_v37  ;;  %2415 = vmatprep.subr.bf16.mxu1 %v3906_v54 }
 0x301   :  { %2289 = vmatpush1.bf16.xpose.msra.mxu0 %v3907_v13 }
 0x302   :  { %2417 = vmatpush1.bf16.xpose.msra.mxu1 %v3908_v27  ;;  %2291 = vmatprep.subr.bf16.mxu0 %v3909_v57 }
 0x303   :  { %2419 = vmatprep.subr.bf16.mxu1 %v3910_v24 }
 0x309   :  { %2293 = vmatpush1.bf16.xpose.msra.mxu0 %v3911_v56 }
 0x30a   :  { %2421 = vmatpush1.bf16.xpose.msra.mxu1 %v3912_v45  ;;  %2295 = vmatprep.subr.bf16.mxu0 %v3913_v46  ;;  %v2613_v46 = vmov 1966171168  }
 0x30b   :  { %2423 = vmatprep.subr.bf16.mxu1 %v3914_v2  ;;  %v1644_v2 = vunpack.c.l.s4 %v2613_v46 }
 0x311   :  { %2297 = vmatpush1.bf16.xpose.msra.mxu0 %v3915_v18  ;;  %v1645_v18 = vunpack.c.0.s8 %v1644_v2 }
 0x312   :  { %2425 = vmatpush1.bf16.xpose.msra.mxu1 %v3916_v55  ;;  %2299 = vmatprep.subr.bf16.mxu0 %v3917_v44  ;;  %v3954_v44 = vld [vmem:[#allocation14_spill] sm:$0xff] }
 0x313   :  { %2427 = vmatprep.subr.bf16.mxu1 %v3918_v61  ;;  %v1648_v61 = vsub.s32 %v1645_v18, %v3954_v44 }
 0x319   :  { %2301 = vmatpush1.bf16.xpose.msra.mxu0 %v3919_v29 }
 0x31a   :  { %2429 = vmatpush1.bf16.xpose.msra.mxu1 %v3920_v3  ;;  %2303 = vmatprep.subr.bf16.mxu0 %v3921_v7 }
 0x31b   :  { %2431 = vmatprep.subr.bf16.mxu1 %v3228_v59  ;;  %v3927_v59 = vld [vmem:[#allocation103_spill] sm:$0xff] }
 0x321   :  { %2305 = vmatpush1.bf16.xpose.msra.mxu0 %v3922_v8 }
 0x322   :  { %2433 = vmatpush1.bf16.xpose.msra.mxu1 %v3234_v40  ;;  %2307 = vmatprep.subr.bf16.mxu0 %v3923_v12  ;;  %v3929_v40 = vld [vmem:[#allocation105_spill] sm:$0xff] }
 0x323   :  { %2435 = vmatprep.subr.bf16.mxu1 %v3240_v11  ;;  %v3930_v11 = vld [vmem:[#allocation136_spill] sm:$0xff] }
 0x329   :  { %2309 = vmatpush1.bf16.xpose.msra.mxu0 %v3924_v16 }
 0x32a   :  { %2437 = vmatpush1.bf16.xpose.msra.mxu1 %v3246_v47  ;;  %2311 = vmatprep.subr.bf16.mxu0 %v3925_v19  ;;  %v3931_v47 = vld [vmem:[#allocation107_spill] sm:$0xff] }
 0x32b   :  { %2439 = vmatprep.subr.bf16.mxu1 %v3252_v1  ;;  %v3933_v1 = vld [vmem:[#allocation109_spill] sm:$0xff] }
 0x331   :  { %2313 = vmatpush1.bf16.xpose.msra.mxu0 %v3926_v17 }
 0x332   :  { %2441 = vmatpush1.bf16.xpose.msra.mxu1 %v3258_v22  ;;  %2315 = vmatprep.subr.bf16.mxu0 %v3927_v59  ;;  %v3935_v22 = vld [vmem:[#allocation111_spill] sm:$0xff]  ;;  %v3955_v59 = vlaneseq }
 0x333   :  { %2443 = vmatprep.subr.bf16.mxu1 %v3928_v21 }
 0x334   :  { %vm1668_vm5 = vcmp.lt.s32.totalorder %v3955_v59, 384 }
 0x339   :  { %1542 = vmatmul.mubr.f32.vlgmr.msra.gmra.mrb[6].mxu1 %v3345_v62  ;;  %2317 = vmatpush1.bf16.xpose.msra.mxu0 %v3929_v40  ;;  %v3938_v62 = vld [vmem:[#allocation144_spill] sm:$0xff] }
 0x33a   :  { %2445 = vmatpush1.bf16.xpose.msra.mxu1 %v3930_v11  ;;  %1611 = vmatprep.mubr.f32.mxu1 %v3347_v0  ;;  %v3940_v0 = vld [vmem:[#allocation146_spill] sm:$0xff] }
 0x33b   :  { %2319 = vmatprep.subr.bf16.mxu0 %v3931_v47  ;;  %2447 = vmatprep.subr.bf16.mxu1 %v3932_v25 }
 0x341   :  { %2321 = vmatpush1.bf16.xpose.msra.mxu0 %v3933_v1 }
 0x342   :  { %2449 = vmatpush1.bf16.xpose.msra.mxu1 %v3934_v26  ;;  %2323 = vmatprep.subr.bf16.mxu0 %v3935_v22 }
 0x343   :  { %2451 = vmatprep.subr.bf16.mxu1 %v3936_v30 }
 0x349   :  { %2325 = vmatpush1.bf16.xpose.msra.mxu0 %v3937_v34 }
 0x34a   :  { %2453 = vmatpush1.bf16.xpose.msra.mxu1 %v3938_v62  ;;  %2327 = vmatprep.subr.bf16.mxu0 %v3939_v38 }
 0x34b   :  { %v1119_v39 = vpop.f32.mrb[4].mxu1  ;;  %2455 = vmatprep.subr.bf16.mxu1 %v3940_v0 }
 0x34c   :  { %v1121_v43 = vpop.f32.mrb[5].mxu1 }
 0x351   :  { %2329 = vmatpush1.bf16.xpose.msra.mxu0 %v3941_v50 }
 0x352   :  { %2457 = vmatpush1.bf16.xpose.msra.mxu1 %v3942_v51  ;;  %2331 = vmatprep.subr.bf16.mxu0 %v3943_v52 }
 0x353   :  { %2459 = vmatprep.subr.bf16.mxu1 %v3944_v32 }
 0x359   :  { %2333 = vmatpush1.bf16.xpose.msra.mxu0 %v3945_v14 }
 0x35a   :  { %2461 = vmatpush1.bf16.xpose.msra.mxu1 %v3946_v63  ;;  %2335 = vmatprep.subr.bf16.mxu0 %v3947_v5 }
 0x35b   :  { %2463 = vmatprep.subr.bf16.mxu1 %v3948_v23 }
 0x361   :  { %2337 = vmatpush1.bf16.xpose.msra.mxu0 %v3949_v33 }
 0x362   :  { %2465 = vmatpush1.bf16.xpose.msra.mxu1 %v3238_v31  ;;  %2339 = vmatprep.subr.bf16.mxu0 %v3950_v35 }
 0x363   :  { %2467 = vmatprep.subr.bf16.mxu1 %v3243_v42 }
 0x369   :  { %2341 = vmatpush1.bf16.xpose.msra.mxu0 %v3951_v41 }
 0x36a   :  { %2469 = vmatpush1.bf16.xpose.msra.mxu1 %v3250_v28  ;;  %2343 = vmatprep.subr.bf16.mxu0 %v3952_v48 }
 0x36b   :  { %2471 = vmatprep.subr.bf16.mxu1 %v3255_v60 }
 0x371   :  { %2345 = vmatpush1.bf16.xpose.msra.mxu0 %v3953_v49 }
 0x372   :  { %2473 = vmatpush1.bf16.xpose.msra.mxu1 %v3262_v4 }
 0x378   :  { %1331 = vmatmul.mubr.f32.vlgmr.msra.gmra.mrb[4].mxu0 %v3349_v15 }
 0x379   :  { %1612 = vmatmul.mubr.f32.vlgmr.msra.gmra.mrb[6].mxu1 %v3349_v15 }
 0x44b   :  { %v1332_v31 = vpop.f32.mrb[4].mxu0 }
 0x44c   :  { %v2474_v53 = vadd.f32 %v1332_v31, %v1119_v39  ;;  %v1613_v58 = vpop.f32.mrb[6].mxu1  ;;  %v1334_v42 = vpop.f32.mrb[5].mxu0 }
 0x44d   :  { %v2475_v36 = vadd.f32 %v1334_v42, %v1121_v43  ;;  %v1615_v6 = vpop.f32.mrb[7].mxu1  ;;  %v1619_v28 = vmul.f32 %v1613_v58, %v1613_v58 }
 0x44e   :  { %v1617_v9 = vmul.f32 %v2474_v53, %v2474_v53 }
 0x44f   :  { %v1618_v10 = vmul.f32 %v2475_v36, %v2475_v36  ;;  %v1623_v4 = vsel %vm1018_vm0, %v1619_v28, 0.0 }
 0x450   :  { %v1620_v20 = vsel %vm1018_vm0, %v1617_v9, 0.0 }
 0x451   :  { %v1621_v60 = vsel %vm1018_vm0, %v1618_v10, 0.0 }
 0x452   :  { %v1622_v37 = vadd.f32 %v1621_v60, %v1620_v20 }
 0x454   :  { %v1624_v54 = vadd.f32 %v1623_v4, %v1622_v37 }
 0x456   :  { %1625 = vadd.xlane.f32.xlu0 %v1624_v54 }
 0x4e3   :  { %v1626_v13 = vpop.xlane.xlu0 %1625 }
 0x4e4   :  { %2506 = vrsqrt.f32 %v1626_v13  ;;  %vm1629_vm3 = vcmp.eq.f32.partialorder %v1626_v13, inf  ;;  %v1632_v57 = vand.u32 2147483648, %v1626_v13  ;;  %vm1631_vm4 = vcmp.eq.f32.partialorder %v1626_v13, 0.0 }
 0x4ee   :  { %v2507_v15 = vpop.eup %2506 }
 0x4ef   :  { %v1628_v27 = vmul.f32 %v2507_v15, %v1626_v13 }
 0x4f1   :  { %v1630_v24 = vsel %vm1629_vm3, %v1626_v13, %v1628_v27 }
 0x4f2   :  { %v1633_v56 = vsel %vm1631_vm4, %v1632_v57, %v1630_v24 }
 0x4f3   :  { %v1634_v45 = vmax.f32 %v1633_v56, 1e-12 }
 0x4f5   :  { %2508 = vrcp.f32 %v1634_v45 }
 0x4ff   :  { %v2509_v55 = vpop.eup %2508 }
 0x500   :  { %v1671_v29 = vmul.f32 %v2509_v55, %v1626_v13  ;;  %v1636_v3 = vmul.f32 %v2509_v55, %v2474_v53  ;;  %v1637_v7 = vmul.f32 %v2509_v55, %v2475_v36  ;;  %v1638_v8 = vmul.f32 %v2509_v55, %v1613_v58 }
 0x502   :  { %2510 = vrcp.f32 %v1671_v29  ;;  %v1642_v12 = vcombine.low %v1636_v3, %v1637_v7  ;;  %v1656_v19 = vrot.slane %v1638_v8, %v1648_v61 }
 0x504   :  { %v1649_v16 = vrot.slane %v1642_v12, %v1648_v61 }
 0x506   :  { %v1657_v17 = vcombine.low %v1649_v16, %v1656_v19 }
 0x508   :  { %v1664_v21 = vrot.slane %v1657_v17, %v1648_v61 }
 0x50a   :  { %1670 = vst.msk [vmem:[#allocation7] sm:$0x7] %vm1668_vm5, %v1664_v21 }
 0x50b   :  { %2567 = shalt.err (!%p2564_p6)
}
 0x50c   :  { %s2568_s18 = scalar_lea.hbm %s3529_s2, 48 }
 0x50d   :  { %p2569_p7 = scmp.ne.s32.totalorder %s3529_s2, %s2568_s18  ;;  %p2572_p8 = scmp.lt.u32.totalorder %s2568_s18, %s3529_s2 }
 0x50f   :  { %p2574_p9 = pnand %p2572_p8, %p2569_p7 }
 0x511   :  { %2577 = shalt.err (!%p2574_p9)
}
 0x512   :  { %1685 = dma.vmem_to_hbm [thread:$0]  %s1683_s11, 48, %s3529_s2, [#allocation4]   ;;  %v2511_v40 = vpop.eup %2510 }
 0x513   :  { %1675 = vst.msk [vmem:[#allocation8] sm:$0x1] %vm1674_vm6, %v2511_v40  ;;  %s2578_s25 = scalar_lea.vmem %s3494_s13, 16  ;;  %s2582_s26 = scalar_lea.vmem %s3494_s13, 32 }
 0x514   :  { %p2579_p10 = scmp.ne.s32.totalorder %s3494_s13, %s2578_s25  ;;  %p2583_p11 = scmp.lt.s32.totalorder %s3494_s13, %s3494_s13 }
 0x515   :  { %p2584_p12 = scmp.lt.s32.totalorder %s2582_s26, %s2578_s25 }
 0x517   :  { %p2585_p13 = por %p2584_p12, %p2583_p11 }
 0x519   :  { %p2586_p0 = pnand %p2585_p13, %p2579_p10 }
 0x51b   :  { %2589 = shalt.err (!%p2586_p0)
}
 0x51c   :  { %s2590_s29 = scalar_lea.hbm %s3530_s3, 16 }
 0x51d   :  { %p2591_p1 = scmp.ne.s32.totalorder %s3530_s3, %s2590_s29  ;;  %p2594_p2 = scmp.lt.u32.totalorder %s2590_s29, %s3530_s3 }
 0x51f   :  { %p2596_p3 = pnand %p2594_p2, %p2591_p1 }
 0x521   :  { %2599 = shalt.err (!%p2596_p3)
}
 0x522   :  { %1695 = dma.vmem_to_hbm [thread:$0]  %s3494_s13, 16, %s3530_s3, [#allocation9]  }
 0x523   :  { %2604 = dma.done.wait [#allocation4], 48  }
 0x524   :  { %2605 = vsyncadd [#allocation4], 4294967248 }
 0x525   :  { %2606 = dma.done.wait [#allocation9], 16  }
 0x526   :  { %2607 = vsyncadd [#allocation9], 4294967280 }
 0x527   :  { %1702 = vsyncpa [#allocation3], 1 }
 0x528   :  { %1703 = vsyncpa [#allocation6], 1 }
 0x529   :  { %1704 = vsyncpa [#allocation4], 1 }
 0x52a   :  { %1705 = vsyncpa [#allocation9], 1 }

</bundles_post_ra>
